<compile_context>
chip_gen: v6e
topology: v6e:2x2x1
jax: 0.10.0
libtpu: 0.0.40
codegen_flags: <defaults>
</compile_context>

<pallas_src>
import functools

import jax
import jax.numpy as jnp
import numpy as np
from jax.experimental import pallas as pl
from jax.experimental.pallas import tpu as pltpu

_BN_EPS = 1e-5
_INV_SQRT2 = 0.7071067811865476
_LANE = 128
_MIB = 1024 * 1024


def _round_up(x, m):
    return (x + m - 1) // m * m


def _gelu(y):
    # exact (erf-based) GELU, matching torch.nn.GELU() default
    return 0.5 * y * (1.0 + jax.lax.erf(y * _INV_SQRT2))


def _vmem_capacity_bytes():
    try:
        info = pltpu.get_tpu_info()
        return int(getattr(info, "vmem_capacity_bytes", 128 * _MIB))
    except Exception:
        return 128 * _MIB


def _pick_group_rows(bh_pad, w, target_rows):
    """g = (b,h) groups per tile.  bh_pad is a multiple of 8, so a multiple-of-8
    divisor always exists and the tile is always bounded (never the whole array)."""
    cands = [g for g in range(8, bh_pad + 1, 8) if bh_pad % g == 0]
    target = max(target_rows, 8 * w)                 # 8-group tiles are always allowed
    fitting = [g for g in cands if g * w <= target]
    multi = [g for g in fitting if bh_pad // g >= 2]  # prefer >=2 tiles (megacore balance)
    pool = multi if multi else fitting
    return max(pool)


def _pick_num_chunks(tile_rows):
    """Sub-chunks per tile so chunk i's MXU matmul can overlap chunk i+1's GELU."""
    for n in (8, 4, 2):
        sub = tile_rows // n
        if tile_rows % n == 0 and sub % 8 == 0 and sub >= 64:
            return n
    return 1


def _layer_kernel(n_sub, sub_rows, n_real, has_bn, needs_mask, *refs):
    """One network layer over a row tile:
         z = gelu(x * scale + shift)     (layer 1: z = x, no BN/GELU)
         y = z @ w                       (this layer's pre-BN output)
    Writes y (bf16) for the next pass and per-tile column sum / sum-of-squares of y;
    batch statistics are finalized in the wrapper (keeps the grid 'parallel')."""
    if has_bn:
        x_ref, w_ref, sc_ref, sh_ref, y_ref, stat_ref = refs
    else:
        x_ref, w_ref, y_ref, stat_ref = refs
        sc_ref = sh_ref = None

    tile_rows = n_sub * sub_rows
    t = pl.program_id(0)
    w = w_ref[...]                                   # resident weight (hoisted load)
    if has_bn:
        sc = sc_ref[...]
        sh = sh_ref[...]

    c_pad = y_ref.shape[-1]
    colsum = jnp.zeros((1, c_pad), jnp.float32)
    colsq = jnp.zeros((1, c_pad), jnp.float32)

    # Independent sub-chunks: the packer can co-issue chunk i's matmul (MXU) with
    # chunk i+1's erf-GELU / BN FMA (VPU) and the column reductions.
    for c in range(n_sub):
        off = c * sub_rows
        xin = x_ref[pl.ds(off, sub_rows), :]
        if has_bn:
            z = _gelu(xin.astype(jnp.float32) * sc + sh).astype(jnp.bfloat16)
        else:
            z = xin
        y = jnp.dot(z, w, preferred_element_type=jnp.float32)
        y_ref[pl.ds(off, sub_rows), :] = y.astype(jnp.bfloat16)
        if needs_mask:
            row = (t * tile_rows + off
                   + jax.lax.broadcasted_iota(jnp.int32, (sub_rows, c_pad), 0))
            y = jnp.where(row < n_real, y, 0.0)       # exclude padded rows from stats
        colsum = colsum + jnp.sum(y, axis=0, keepdims=True)
        colsq = colsq + jnp.sum(y * y, axis=0, keepdims=True)

    # two direct row-slice stores (no concatenate relayout)
    stat_ref[0:1, 0:1, :] = colsum.reshape(1, 1, c_pad)
    stat_ref[0:1, 1:2, :] = colsq.reshape(1, 1, c_pad)


def _final_kernel(W, g_rows, x_ref, sc_ref, sh_ref, o_ref):
    """z = gelu(y3 * scale + shift); mean over W (rows are (b, h, w) with w fastest)."""
    sc = sc_ref[...]
    sh = sh_ref[...]
    c_pad = o_ref.shape[-1]
    inv_w = jnp.float32(1.0 / W)
    if W % 8 == 0:
        # group boundaries coincide with sublane boundaries -> reshape is a free view
        act = _gelu(x_ref[...].astype(jnp.float32) * sc + sh)
        pooled = jnp.sum(act.reshape(g_rows, W, c_pad), axis=1) * inv_w
    else:
        # W-strided accumulation avoids the relayout copy the reshape would force
        pooled = jnp.zeros((g_rows, c_pad), jnp.float32)
        for w in range(W):
            yw = x_ref[pl.ds(w, g_rows, stride=W), :].astype(jnp.float32) * sc + sh
            pooled = pooled + _gelu(yw)
        pooled = pooled * inv_w
    o_ref[...] = pooled                               # lane-dense (g_rows, c_pad) store


def _fold_bn(colsum, colsq, counts, n_real, gamma, beta):
    """Chan-style merge of per-tile partials -> folded BN scale/shift.
    colsum/colsq: (n_tiles, c_pad) raw per-tile sums; counts: (n_tiles, 1) real rows."""
    mean = jnp.sum(colsum, axis=0, keepdims=True) / n_real
    m_i = colsum / counts
    ss_i = jnp.maximum(colsq - counts * m_i * m_i, 0.0)          # within-tile centered
    var = (jnp.sum(ss_i, axis=0, keepdims=True)
           + jnp.sum(counts * (m_i - mean) ** 2, axis=0, keepdims=True)) / n_real
    inv_std = jax.lax.rsqrt(var + _BN_EPS)
    scale = gamma * inv_std                                      # gamma * inv_std
    shift = beta - mean * scale                                  # beta - mean*gamma*inv_std
    return scale, shift


def edgeconv1_forward(x, params, *, max_tile_rows=None):
    """x: (B, H, W, C_in) float32 (the tensor PyTorch permutes to NCHW).
    Returns (B, C_out, H) float32, matching the PyTorch module's output.
    BatchNorm uses training-mode batch statistics (fresh module, biased variance)."""
    B, H, W, C_in = x.shape
    w1, w2, w3, g1, b1, g2, b2, g3, b3 = params
    C_out = w1.shape[1]
    c_pad = _round_up(C_out, _LANE)
    BH = B * H
    bh_pad = _round_up(BH, 8)
    n_real = BH * W
    n_pad = bh_pad * W
    needs_mask = n_pad != n_real

    vmem_cap = _vmem_capacity_bytes()
    if max_tile_rows is None:
        # generation-aware tile target (v5e/v6e: 128 MiB VMEM -> big tiles; v7x: 64 MiB)
        row_bytes = 4 * max(C_in, c_pad) + 8 * c_pad
        max_tile_rows = int(np.clip((vmem_cap // 6) // row_bytes, 1024, 8192))

    g_rows = _pick_group_rows(bh_pad, W, max_tile_rows)   # (b,h) groups per tile
    TR = g_rows * W                                       # rows per tile
    n_tiles = bh_pad // g_rows
    n_sub = _pick_num_chunks(TR)
    sub_rows = TR // n_sub

    # --- pad C_out to lane width (pad lanes stay exactly 0 through the network) ---
    def pad_cols(a):
        return jnp.pad(a, ((0, 0), (0, c_pad - a.shape[1])))

    w1p = pad_cols(w1).astype(jnp.bfloat16)                                   # (C_in, c_pad)
    w2p = jnp.pad(w2, ((0, c_pad - C_out), (0, c_pad - C_out))).astype(jnp.bfloat16)
    w3p = jnp.pad(w3, ((0, c_pad - C_out), (0, c_pad - C_out))).astype(jnp.bfloat16)
    g1p, b1p = pad_cols(g1), pad_cols(b1)
    g2p, b2p = pad_cols(g2), pad_cols(b2)
    g3p, b3p = pad_cols(g3), pad_cols(b3)

    x2d = x.reshape(n_real, C_in).astype(jnp.bfloat16)
    if needs_mask:
        x2d = jnp.pad(x2d, ((0, n_pad - n_real), (0, 0)))   # zero pad rows (masked in stats)

    # rough working-set estimate -> scoped VMEM limit with generation-aware ceiling
    est = (2 * TR * max(C_in, c_pad) * 2        # streamed input (double-buffered, bf16)
           + 2 * TR * c_pad * 2                 # streamed y output (double-buffered, bf16)
           + 2 * max(C_in, c_pad) * c_pad * 2   # resident weights
           + 4 * sub_rows * c_pad * 4           # f32 chunk temporaries
           + 2 * g_rows * c_pad * 4)            # pooled output block
    upper = min(48 * _MIB, int(0.6 * vmem_cap))             # ~38 MiB on v7x, 48 MiB on v5e/v6e
    vmem_limit = int(min(max(int(1.5 * est), min(32 * _MIB, upper)), upper))
    cparams = pltpu.CompilerParams(dimension_semantics=("parallel",),
                                   vmem_limit_bytes=vmem_limit)

    # --- BlockSpecs ---
    x_in_spec = pl.BlockSpec((TR, C_in), lambda t: (t, 0))       # streamed x tile
    y_spec = pl.BlockSpec((TR, c_pad), lambda t: (t, 0))         # streamed cached activations
    w1_spec = pl.BlockSpec((C_in, c_pad), lambda t: (0, 0))      # resident
    ww_spec = pl.BlockSpec((c_pad, c_pad), lambda t: (0, 0))     # resident
    v_spec = pl.BlockSpec((1, c_pad), lambda t: (0, 0))          # resident scale/shift
    stat_spec = pl.BlockSpec((1, 2, c_pad), lambda t: (t, 0, 0))  # per-tile partial stats

    y_shape = jax.ShapeDtypeStruct((n_pad, c_pad), jnp.bfloat16)
    stat_shape = jax.ShapeDtypeStruct((n_tiles, 2, c_pad), jnp.float32)

    def layer_call(has_bn, in_specs):
        return pl.pallas_call(
            functools.partial(_layer_kernel, n_sub, sub_rows, n_real, has_bn, needs_mask),
            grid=(n_tiles,),
            in_specs=in_specs,
            out_specs=(y_spec, stat_spec),
            out_shape=(y_shape, stat_shape),
            compiler_params=cparams,
        )

    counts = np.full((n_tiles, 1), TR, np.float32)
    counts[-1, 0] = TR - (n_pad - n_real)                 # last tile holds any padded rows
    counts = jnp.asarray(counts)

    # layer 1: y1 = x @ w1 (+ stats of y1); layers 2/3 stream the cached previous
    # pre-BN output, apply folded BN + erf-GELU, one matmul each (no recompute).
    y1, p1 = layer_call(False, [x_in_spec, w1_spec])(x2d, w1p)
    sc1, sh1 = _fold_bn(p1[:, 0, :], p1[:, 1, :], counts, n_real, g1p, b1p)
    y2, p2 = layer_call(True, [y_spec, ww_spec, v_spec, v_spec])(y1, w2p, sc1, sh1)
    sc2, sh2 = _fold_bn(p2[:, 0, :], p2[:, 1, :], counts, n_real, g2p, b2p)
    y3, p3 = layer_call(True, [y_spec, ww_spec, v_spec, v_spec])(y2, w3p, sc2, sh2)
    sc3, sh3 = _fold_bn(p3[:, 0, :], p3[:, 1, :], counts, n_real, g3p, b3p)

    # final pass: BN3 + GELU + mean over W (matmul-free), tiles independent -> megacore
    out_pad = pl.pallas_call(
        functools.partial(_final_kernel, W, g_rows),
        grid=(n_tiles,),
        in_specs=[y_spec, v_spec, v_spec],
        out_specs=pl.BlockSpec((g_rows, c_pad), lambda t: (t, 0)),
        out_shape=jax.ShapeDtypeStruct((bh_pad, c_pad), jnp.float32),
        compiler_params=cparams,
    )(y3, sc3, sh3)

    # (BH_pad, c_pad) -> drop pad rows / pad lanes -> (B, H, C_out) -> (B, C_out, H)
    return out_pad[:BH, :C_out].reshape(B, H, C_out).transpose(0, 2, 1)


def edgeconv1_reference(x, params):
    """Pure-JAX f32 reference with the module's semantics (erf GELU, training-mode
    BatchNorm with biased variance), for a sanity check."""
    B, H, W, C_in = x.shape
    w1, w2, w3, g1, b1, g2, b2, g3, b3 = params

    def bn_gelu(y, g, b):
        mu = y.mean(0, keepdims=True)
        var = ((y - mu) ** 2).mean(0, keepdims=True)
        y = (y - mu) / jnp.sqrt(var + _BN_EPS) * g + b
        return 0.5 * y * (1.0 + jax.lax.erf(y * _INV_SQRT2))

    y = x.reshape(-1, C_in)
    y = bn_gelu(jnp.dot(y, w1), g1, b1)
    y = bn_gelu(jnp.dot(y, w2), g2, b2)
    y = bn_gelu(jnp.dot(y, w3), g3, b3)
    y = y.reshape(B, H, W, -1).mean(axis=2)
    return y.transpose(0, 2, 1)


def make_params(key, c_in, c_out):
    ks = jax.random.split(key, 9)
    # Conv2d 1x1 weights (bias=False), stored pre-transposed as (C_in, C_out) so y = x @ w.
    w1 = 0.3 * jax.random.normal(ks[0], (c_in, c_out), jnp.float32)
    w2 = 0.3 * jax.random.normal(ks[1], (c_out, c_out), jnp.float32)
    w3 = 0.3 * jax.random.normal(ks[2], (c_out, c_out), jnp.float32)
    # BatchNorm affine params (gamma, beta), shape (1, C_out) for lane broadcast.
    g1 = 1.0 + 0.1 * jax.random.normal(ks[3], (1, c_out), jnp.float32)
    b1 = 0.1 * jax.random.normal(ks[4], (1, c_out), jnp.float32)
    g2 = 1.0 + 0.1 * jax.random.normal(ks[5], (1, c_out), jnp.float32)
    b2 = 0.1 * jax.random.normal(ks[6], (1, c_out), jnp.float32)
    g3 = 1.0 + 0.1 * jax.random.normal(ks[7], (1, c_out), jnp.float32)
    b3 = 0.1 * jax.random.normal(ks[8], (1, c_out), jnp.float32)
    return (w1, w2, w3, g1, b1, g2, b2, g3, b3)


if __name__ == "__main__":
    def run_case(B, H, W, C_IN, C_OUT, max_tile_rows, kx, kp):
        x = jax.random.normal(kx, (B, H, W, C_IN), jnp.float32)
        params = make_params(kp, C_IN, C_OUT)
        fwd = jax.jit(functools.partial(edgeconv1_forward, max_tile_rows=max_tile_rows))
        out = jax.block_until_ready(fwd(x, params))
        ref = jax.block_until_ready(edgeconv1_reference(x, params))
        assert out.shape == (B, C_OUT, H), out.shape
        # tolerance accounts for bf16 MXU operands + bf16-cached inter-layer
        # activations vs. the pure-f32 reference (3 chained layers).
        np.testing.assert_allclose(np.asarray(out), np.asarray(ref), rtol=3e-2, atol=3e-2)

    k1, k2, k3, k4 = jax.random.split(jax.random.PRNGKey(0), 4)

    # main case: 2 row tiles x 2 sub-chunks each (exercises streaming + interleave path)
    run_case(2, 8, 16, 16, 32, 128, k1, k2)
    # ragged case: B*H not a multiple of 8 -> padded rows + masked batch statistics
    run_case(2, 7, 16, 16, 32, 128, k3, k4)

    print("KERNEL_OK")
</pallas_src>

<mosaic_0001>
module attributes {stable_mosaic.version = 11 : i64} {
  func.func @_layer_kernel(%arg0: i32, %arg1: memref<128x16xbf16, #tpu.memory_space<vmem>>, %arg2: memref<16x128xbf16, #tpu.memory_space<vmem>>, %arg3: memref<128x128xbf16, #tpu.memory_space<vmem>>, %arg4: memref<1x2x128xf32, #tpu.memory_space<vmem>>) attributes {dimension_semantics = [#tpu.dimension_semantics<parallel>], iteration_bounds = array<i64: 2>, scalar_prefetch = 0 : i64, scratch_operands = 0 : i64, tpu.core_type = #tpu.core_type<tc>, window_params = [{transform_indices = @transform_0, window_bounds = array<i64: 128, 16>}, {pipeline_mode = #tpu.pipeline_mode<synchronous>, transform_indices = @transform_1, window_bounds = array<i64: 16, 128>}, {transform_indices = @transform_2, window_bounds = array<i64: 128, 128>}, {transform_indices = @transform_3, window_bounds = array<i64: 1, 2, 128>}]} {
    %c0 = arith.constant 0 : index
    %c0_0 = arith.constant 0 : index
    %0 = vector.load %arg2[%c0, %c0_0] : memref<16x128xbf16, #tpu.memory_space<vmem>>, vector<16x128xbf16>
    %cst = arith.constant 0.000000e+00 : f32
    %1 = vector.broadcast %cst : f32 to vector<1x128xf32>
    %cst_1 = arith.constant 0.000000e+00 : f32
    %2 = vector.broadcast %cst_1 : f32 to vector<1x128xf32>
    %c0_2 = arith.constant 0 : index
    %c0_3 = arith.constant 0 : index
    %3 = vector.load %arg1[%c0_2, %c0_3] : memref<128x16xbf16, #tpu.memory_space<vmem>>, vector<64x16xbf16>
    %cst_4 = arith.constant dense<0.000000e+00> : vector<64x128xf32>
    %4 = tpu.matmul %3, %0, %cst_4 {dimension_numbers = #tpu.dot_dimension_numbers<[1], [0], [0], [1], [0, 0, 1, 1], [], []>} : vector<64x16xbf16>, vector<16x128xbf16>, vector<64x128xf32> -> vector<64x128xf32>
    %5 = arith.truncf %4 : vector<64x128xf32> to vector<64x128xbf16>
    %c0_5 = arith.constant 0 : index
    %c0_6 = arith.constant 0 : index
    %6 = vector.load %arg3[%c0_5, %c0_6] : memref<128x128xbf16, #tpu.memory_space<vmem>>, vector<64x128xbf16>
    tpu.vector_store %arg3[%c0_5, %c0_6], %5 {strides = array<i32>} : memref<128x128xbf16, #tpu.memory_space<vmem>>, vector<64x128xbf16>,
    %cst_7 = arith.constant dense<0.000000e+00> : vector<128xf32>
    %7 = vector.multi_reduction <add>, %4, %cst_7 [0] : vector<64x128xf32> to vector<128xf32>
    %8 = vector.shape_cast %7 : vector<128xf32> to vector<1x128xf32>
    %9 = arith.addf %1, %8 : vector<1x128xf32>
    %10 = arith.mulf %4, %4 : vector<64x128xf32>
    %cst_8 = arith.constant dense<0.000000e+00> : vector<128xf32>
    %11 = vector.multi_reduction <add>, %10, %cst_8 [0] : vector<64x128xf32> to vector<128xf32>
    %12 = vector.shape_cast %11 : vector<128xf32> to vector<1x128xf32>
    %13 = arith.addf %2, %12 : vector<1x128xf32>
    %c64 = arith.constant 64 : index
    %c0_9 = arith.constant 0 : index
    %14 = vector.load %arg1[%c64, %c0_9] : memref<128x16xbf16, #tpu.memory_space<vmem>>, vector<64x16xbf16>
    %cst_10 = arith.constant dense<0.000000e+00> : vector<64x128xf32>
    %15 = tpu.matmul %14, %0, %cst_10 {dimension_numbers = #tpu.dot_dimension_numbers<[1], [0], [0], [1], [0, 0, 1, 1], [], []>} : vector<64x16xbf16>, vector<16x128xbf16>, vector<64x128xf32> -> vector<64x128xf32>
    %16 = arith.truncf %15 : vector<64x128xf32> to vector<64x128xbf16>
    %c64_11 = arith.constant 64 : index
    %c0_12 = arith.constant 0 : index
    %17 = vector.load %arg3[%c64_11, %c0_12] : memref<128x128xbf16, #tpu.memory_space<vmem>>, vector<64x128xbf16>
    tpu.vector_store %arg3[%c64_11, %c0_12], %16 {strides = array<i32>} : memref<128x128xbf16, #tpu.memory_space<vmem>>, vector<64x128xbf16>,
    %cst_13 = arith.constant dense<0.000000e+00> : vector<128xf32>
    %18 = vector.multi_reduction <add>, %15, %cst_13 [0] : vector<64x128xf32> to vector<128xf32>
    %19 = vector.shape_cast %18 : vector<128xf32> to vector<1x128xf32>
    %20 = arith.addf %9, %19 : vector<1x128xf32>
    %21 = arith.mulf %15, %15 : vector<64x128xf32>
    %cst_14 = arith.constant dense<0.000000e+00> : vector<128xf32>
    %22 = vector.multi_reduction <add>, %21, %cst_14 [0] : vector<64x128xf32> to vector<128xf32>
    %23 = vector.shape_cast %22 : vector<128xf32> to vector<1x128xf32>
    %24 = arith.addf %13, %23 : vector<1x128xf32>
    %25 = vector.shape_cast %20 : vector<1x128xf32> to vector<1x1x128xf32>
    %c0_15 = arith.constant 0 : index
    %c0_16 = arith.constant 0 : index
    %c0_17 = arith.constant 0 : index
    %26 = vector.load %arg4[%c0_15, %c0_16, %c0_17] : memref<1x2x128xf32, #tpu.memory_space<vmem>>, vector<1x1x128xf32>
    tpu.vector_store %arg4[%c0_15, %c0_16, %c0_17], %25 {strides = array<i32>} : memref<1x2x128xf32, #tpu.memory_space<vmem>>, vector<1x1x128xf32>,
    %27 = vector.shape_cast %24 : vector<1x128xf32> to vector<1x1x128xf32>
    %c0_18 = arith.constant 0 : index
    %c1 = arith.constant 1 : index
    %c0_19 = arith.constant 0 : index
    %28 = vector.load %arg4[%c0_18, %c1, %c0_19] : memref<1x2x128xf32, #tpu.memory_space<vmem>>, vector<1x1x128xf32>
    tpu.vector_store %arg4[%c0_18, %c1, %c0_19], %27 {strides = array<i32>} : memref<1x2x128xf32, #tpu.memory_space<vmem>>, vector<1x1x128xf32>,
    return
  }
  func.func @transform_0(%arg0: i32) -> (i32, i32) {
    %c0_i32 = arith.constant 0 : i32
    %c0_i32_0 = arith.constant 0 : i32
    return %arg0, %c0_i32 : i32, i32
  }
  func.func @transform_1(%arg0: i32) -> (i32, i32) {
    %c0_i32 = arith.constant 0 : i32
    %c0_i32_0 = arith.constant 0 : i32
    %c0_i32_1 = arith.constant 0 : i32
    return %c0_i32, %c0_i32_0 : i32, i32
  }
  func.func @transform_2(%arg0: i32) -> (i32, i32) {
    %c0_i32 = arith.constant 0 : i32
    %c0_i32_0 = arith.constant 0 : i32
    return %arg0, %c0_i32 : i32, i32
  }
  func.func @transform_3(%arg0: i32) -> (i32, i32, i32) {
    %c0_i32 = arith.constant 0 : i32
    %c0_i32_0 = arith.constant 0 : i32
    %c0_i32_1 = arith.constant 0 : i32
    return %arg0, %c0_i32, %c0_i32_0 : i32, i32, i32
  }
}

module attributes {stable_mosaic.version = 11 : i64} {
  func.func @_layer_kernel(%arg0: i32, %arg1: memref<128x128xbf16, #tpu.memory_space<vmem>>, %arg2: memref<128x128xbf16, #tpu.memory_space<vmem>>, %arg3: memref<1x128xf32, #tpu.memory_space<vmem>>, %arg4: memref<1x128xf32, #tpu.memory_space<vmem>>, %arg5: memref<128x128xbf16, #tpu.memory_space<vmem>>, %arg6: memref<1x2x128xf32, #tpu.memory_space<vmem>>) attributes {dimension_semantics = [#tpu.dimension_semantics<parallel>], iteration_bounds = array<i64: 2>, scalar_prefetch = 0 : i64, scratch_operands = 0 : i64, tpu.core_type = #tpu.core_type<tc>, window_params = [{transform_indices = @transform_0, window_bounds = array<i64: 128, 128>}, {pipeline_mode = #tpu.pipeline_mode<synchronous>, transform_indices = @transform_1, window_bounds = array<i64: 128, 128>}, {pipeline_mode = #tpu.pipeline_mode<synchronous>, transform_indices = @transform_2, window_bounds = array<i64: 1, 128>}, {pipeline_mode = #tpu.pipeline_mode<synchronous>, transform_indices = @transform_3, window_bounds = array<i64: 1, 128>}, {transform_indices = @transform_4, window_bounds = array<i64: 128, 128>}, {transform_indices = @transform_5, window_bounds = array<i64: 1, 2, 128>}]} {
    %c0 = arith.constant 0 : index
    %c0_0 = arith.constant 0 : index
    %0 = vector.load %arg2[%c0, %c0_0] : memref<128x128xbf16, #tpu.memory_space<vmem>>, vector<128x128xbf16>
    %c0_1 = arith.constant 0 : index
    %c0_2 = arith.constant 0 : index
    %1 = vector.load %arg3[%c0_1, %c0_2] : memref<1x128xf32, #tpu.memory_space<vmem>>, vector<1x128xf32>
    %c0_3 = arith.constant 0 : index
    %c0_4 = arith.constant 0 : index
    %2 = vector.load %arg4[%c0_3, %c0_4] : memref<1x128xf32, #tpu.memory_space<vmem>>, vector<1x128xf32>
    %cst = arith.constant 0.000000e+00 : f32
    %3 = vector.broadcast %cst : f32 to vector<1x128xf32>
    %cst_5 = arith.constant 0.000000e+00 : f32
    %4 = vector.broadcast %cst_5 : f32 to vector<1x128xf32>
    %c0_6 = arith.constant 0 : index
    %c0_7 = arith.constant 0 : index
    %5 = vector.load %arg1[%c0_6, %c0_7] : memref<128x128xbf16, #tpu.memory_space<vmem>>, vector<64x128xbf16>
    %6 = arith.extf %5 : vector<64x128xbf16> to vector<64x128xf32>
    %7 = vector.broadcast %1 : vector<1x128xf32> to vector<64x128xf32>
    %8 = arith.mulf %6, %7 : vector<64x128xf32>
    %9 = vector.broadcast %2 : vector<1x128xf32> to vector<64x128xf32>
    %10 = arith.addf %8, %9 : vector<64x128xf32>
    %cst_8 = arith.constant 5.000000e-01 : f32
    %11 = vector.broadcast %cst_8 : f32 to vector<64x128xf32>
    %12 = arith.mulf %11, %10 : vector<64x128xf32>
    %cst_9 = arith.constant 0.707106769 : f32
    %13 = vector.broadcast %cst_9 : f32 to vector<64x128xf32>
    %14 = arith.mulf %10, %13 : vector<64x128xf32>
    %15 = math.erf %14 : vector<64x128xf32>
    %cst_10 = arith.constant 1.000000e+00 : f32
    %16 = vector.broadcast %cst_10 : f32 to vector<64x128xf32>
    %17 = arith.addf %16, %15 : vector<64x128xf32>
    %18 = arith.mulf %12, %17 : vector<64x128xf32>
    %19 = arith.truncf %18 : vector<64x128xf32> to vector<64x128xbf16>
    %cst_11 = arith.constant dense<0.000000e+00> : vector<64x128xf32>
    %20 = tpu.matmul %19, %0, %cst_11 {dimension_numbers = #tpu.dot_dimension_numbers<[1], [0], [0], [1], [0, 0, 1, 1], [], []>} : vector<64x128xbf16>, vector<128x128xbf16>, vector<64x128xf32> -> vector<64x128xf32>
    %21 = arith.truncf %20 : vector<64x128xf32> to vector<64x128xbf16>
    %c0_12 = arith.constant 0 : index
    %c0_13 = arith.constant 0 : index
    %22 = vector.load %arg5[%c0_12, %c0_13] : memref<128x128xbf16, #tpu.memory_space<vmem>>, vector<64x128xbf16>
    tpu.vector_store %arg5[%c0_12, %c0_13], %21 {strides = array<i32>} : memref<128x128xbf16, #tpu.memory_space<vmem>>, vector<64x128xbf16>,
    %cst_14 = arith.constant dense<0.000000e+00> : vector<128xf32>
    %23 = vector.multi_reduction <add>, %20, %cst_14 [0] : vector<64x128xf32> to vector<128xf32>
    %24 = vector.shape_cast %23 : vector<128xf32> to vector<1x128xf32>
    %25 = arith.addf %3, %24 : vector<1x128xf32>
    %26 = arith.mulf %20, %20 : vector<64x128xf32>
    %cst_15 = arith.constant dense<0.000000e+00> : vector<128xf32>
    %27 = vector.multi_reduction <add>, %26, %cst_15 [0] : vector<64x128xf32> to vector<128xf32>
    %28 = vector.shape_cast %27 : vector<128xf32> to vector<1x128xf32>
    %29 = arith.addf %4, %28 : vector<1x128xf32>
    %c64 = arith.constant 64 : index
    %c0_16 = arith.constant 0 : index
    %30 = vector.load %arg1[%c64, %c0_16] : memref<128x128xbf16, #tpu.memory_space<vmem>>, vector<64x128xbf16>
    %31 = arith.extf %30 : vector<64x128xbf16> to vector<64x128xf32>
    %32 = vector.broadcast %1 : vector<1x128xf32> to vector<64x128xf32>
    %33 = arith.mulf %31, %32 : vector<64x128xf32>
    %34 = vector.broadcast %2 : vector<1x128xf32> to vector<64x128xf32>
    %35 = arith.addf %33, %34 : vector<64x128xf32>
    %cst_17 = arith.constant 5.000000e-01 : f32
    %36 = vector.broadcast %cst_17 : f32 to vector<64x128xf32>
    %37 = arith.mulf %36, %35 : vector<64x128xf32>
    %cst_18 = arith.constant 0.707106769 : f32
    %38 = vector.broadcast %cst_18 : f32 to vector<64x128xf32>
    %39 = arith.mulf %35, %38 : vector<64x128xf32>
    %40 = math.erf %39 : vector<64x128xf32>
    %cst_19 = arith.constant 1.000000e+00 : f32
    %41 = vector.broadcast %cst_19 : f32 to vector<64x128xf32>
    %42 = arith.addf %41, %40 : vector<64x128xf32>
    %43 = arith.mulf %37, %42 : vector<64x128xf32>
    %44 = arith.truncf %43 : vector<64x128xf32> to vector<64x128xbf16>
    %cst_20 = arith.constant dense<0.000000e+00> : vector<64x128xf32>
    %45 = tpu.matmul %44, %0, %cst_20 {dimension_numbers = #tpu.dot_dimension_numbers<[1], [0], [0], [1], [0, 0, 1, 1], [], []>} : vector<64x128xbf16>, vector<128x128xbf16>, vector<64x128xf32> -> vector<64x128xf32>
    %46 = arith.truncf %45 : vector<64x128xf32> to vector<64x128xbf16>
    %c64_21 = arith.constant 64 : index
    %c0_22 = arith.constant 0 : index
    %47 = vector.load %arg5[%c64_21, %c0_22] : memref<128x128xbf16, #tpu.memory_space<vmem>>, vector<64x128xbf16>
    tpu.vector_store %arg5[%c64_21, %c0_22], %46 {strides = array<i32>} : memref<128x128xbf16, #tpu.memory_space<vmem>>, vector<64x128xbf16>,
    %cst_23 = arith.constant dense<0.000000e+00> : vector<128xf32>
    %48 = vector.multi_reduction <add>, %45, %cst_23 [0] : vector<64x128xf32> to vector<128xf32>
    %49 = vector.shape_cast %48 : vector<128xf32> to vector<1x128xf32>
    %50 = arith.addf %25, %49 : vector<1x128xf32>
    %51 = arith.mulf %45, %45 : vector<64x128xf32>
    %cst_24 = arith.constant dense<0.000000e+00> : vector<128xf32>
    %52 = vector.multi_reduction <add>, %51, %cst_24 [0] : vector<64x128xf32> to vector<128xf32>
    %53 = vector.shape_cast %52 : vector<128xf32> to vector<1x128xf32>
    %54 = arith.addf %29, %53 : vector<1x128xf32>
    %55 = vector.shape_cast %50 : vector<1x128xf32> to vector<1x1x128xf32>
    %c0_25 = arith.constant 0 : index
    %c0_26 = arith.constant 0 : index
    %c0_27 = arith.constant 0 : index
    %56 = vector.load %arg6[%c0_25, %c0_26, %c0_27] : memref<1x2x128xf32, #tpu.memory_space<vmem>>, vector<1x1x128xf32>
    tpu.vector_store %arg6[%c0_25, %c0_26, %c0_27], %55 {strides = array<i32>} : memref<1x2x128xf32, #tpu.memory_space<vmem>>, vector<1x1x128xf32>,
    %57 = vector.shape_cast %54 : vector<1x128xf32> to vector<1x1x128xf32>
    %c0_28 = arith.constant 0 : index
    %c1 = arith.constant 1 : index
    %c0_29 = arith.constant 0 : index
    %58 = vector.load %arg6[%c0_28, %c1, %c0_29] : memref<1x2x128xf32, #tpu.memory_space<vmem>>, vector<1x1x128xf32>
    tpu.vector_store %arg6[%c0_28, %c1, %c0_29], %57 {strides = array<i32>} : memref<1x2x128xf32, #tpu.memory_space<vmem>>, vector<1x1x128xf32>,
    return
  }
  func.func @transform_0(%arg0: i32) -> (i32, i32) {
    %c0_i32 = arith.constant 0 : i32
    %c0_i32_0 = arith.constant 0 : i32
    return %arg0, %c0_i32 : i32, i32
  }
  func.func @transform_1(%arg0: i32) -> (i32, i32) {
    %c0_i32 = arith.constant 0 : i32
    %c0_i32_0 = arith.constant 0 : i32
    %c0_i32_1 = arith.constant 0 : i32
    return %c0_i32, %c0_i32_0 : i32, i32
  }
  func.func @transform_2(%arg0: i32) -> (i32, i32) {
    %c0_i32 = arith.constant 0 : i32
    %c0_i32_0 = arith.constant 0 : i32
    %c0_i32_1 = arith.constant 0 : i32
    return %c0_i32, %c0_i32_0 : i32, i32
  }
  func.func @transform_3(%arg0: i32) -> (i32, i32) {
    %c0_i32 = arith.constant 0 : i32
    %c0_i32_0 = arith.constant 0 : i32
    %c0_i32_1 = arith.constant 0 : i32
    return %c0_i32, %c0_i32_0 : i32, i32
  }
  func.func @transform_4(%arg0: i32) -> (i32, i32) {
    %c0_i32 = arith.constant 0 : i32
    %c0_i32_0 = arith.constant 0 : i32
    return %arg0, %c0_i32 : i32, i32
  }
  func.func @transform_5(%arg0: i32) -> (i32, i32, i32) {
    %c0_i32 = arith.constant 0 : i32
    %c0_i32_0 = arith.constant 0 : i32
    %c0_i32_1 = arith.constant 0 : i32
    return %arg0, %c0_i32, %c0_i32_0 : i32, i32, i32
  }
}

module attributes {stable_mosaic.version = 11 : i64} {
  func.func @_final_kernel(%arg0: i32, %arg1: memref<128x128xbf16, #tpu.memory_space<vmem>>, %arg2: memref<1x128xf32, #tpu.memory_space<vmem>>, %arg3: memref<1x128xf32, #tpu.memory_space<vmem>>, %arg4: memref<8x128xf32, #tpu.memory_space<vmem>>) attributes {dimension_semantics = [#tpu.dimension_semantics<parallel>], iteration_bounds = array<i64: 2>, scalar_prefetch = 0 : i64, scratch_operands = 0 : i64, tpu.core_type = #tpu.core_type<tc>, window_params = [{transform_indices = @transform_0, window_bounds = array<i64: 128, 128>}, {pipeline_mode = #tpu.pipeline_mode<synchronous>, transform_indices = @transform_1, window_bounds = array<i64: 1, 128>}, {pipeline_mode = #tpu.pipeline_mode<synchronous>, transform_indices = @transform_2, window_bounds = array<i64: 1, 128>}, {transform_indices = @transform_3, window_bounds = array<i64: 8, 128>}]} {
    %c0 = arith.constant 0 : index
    %c0_0 = arith.constant 0 : index
    %0 = vector.load %arg2[%c0, %c0_0] : memref<1x128xf32, #tpu.memory_space<vmem>>, vector<1x128xf32>
    %c0_1 = arith.constant 0 : index
    %c0_2 = arith.constant 0 : index
    %1 = vector.load %arg3[%c0_1, %c0_2] : memref<1x128xf32, #tpu.memory_space<vmem>>, vector<1x128xf32>
    %c0_3 = arith.constant 0 : index
    %c0_4 = arith.constant 0 : index
    %2 = vector.load %arg1[%c0_3, %c0_4] : memref<128x128xbf16, #tpu.memory_space<vmem>>, vector<128x128xbf16>
    %3 = arith.extf %2 : vector<128x128xbf16> to vector<128x128xf32>
    %4 = vector.broadcast %0 : vector<1x128xf32> to vector<128x128xf32>
    %5 = arith.mulf %3, %4 : vector<128x128xf32>
    %6 = vector.broadcast %1 : vector<1x128xf32> to vector<128x128xf32>
    %7 = arith.addf %5, %6 : vector<128x128xf32>
    %cst = arith.constant 5.000000e-01 : f32
    %8 = vector.broadcast %cst : f32 to vector<128x128xf32>
    %9 = arith.mulf %8, %7 : vector<128x128xf32>
    %cst_5 = arith.constant 0.707106769 : f32
    %10 = vector.broadcast %cst_5 : f32 to vector<128x128xf32>
    %11 = arith.mulf %7, %10 : vector<128x128xf32>
    %12 = math.erf %11 : vector<128x128xf32>
    %cst_6 = arith.constant 1.000000e+00 : f32
    %13 = vector.broadcast %cst_6 : f32 to vector<128x128xf32>
    %14 = arith.addf %13, %12 : vector<128x128xf32>
    %15 = arith.mulf %9, %14 : vector<128x128xf32>
    %16 = vector.shape_cast %15 : vector<128x128xf32> to vector<8x16x128xf32>
    %cst_7 = arith.constant dense<0.000000e+00> : vector<8x128xf32>
    %17 = vector.multi_reduction <add>, %16, %cst_7 [1] : vector<8x16x128xf32> to vector<8x128xf32>
    %cst_8 = arith.constant 6.250000e-02 : f32
    %18 = vector.broadcast %cst_8 : f32 to vector<8x128xf32>
    %19 = arith.mulf %17, %18 : vector<8x128xf32>
    %c0_9 = arith.constant 0 : index
    %c0_10 = arith.constant 0 : index
    %20 = vector.load %arg4[%c0_9, %c0_10] : memref<8x128xf32, #tpu.memory_space<vmem>>, vector<8x128xf32>
    tpu.vector_store %arg4[%c0_9, %c0_10], %19 {strides = array<i32>} : memref<8x128xf32, #tpu.memory_space<vmem>>, vector<8x128xf32>,
    return
  }
  func.func @transform_0(%arg0: i32) -> (i32, i32) {
    %c0_i32 = arith.constant 0 : i32
    %c0_i32_0 = arith.constant 0 : i32
    return %arg0, %c0_i32 : i32, i32
  }
  func.func @transform_1(%arg0: i32) -> (i32, i32) {
    %c0_i32 = arith.constant 0 : i32
    %c0_i32_0 = arith.constant 0 : i32
    %c0_i32_1 = arith.constant 0 : i32
    return %c0_i32, %c0_i32_0 : i32, i32
  }
  func.func @transform_2(%arg0: i32) -> (i32, i32) {
    %c0_i32 = arith.constant 0 : i32
    %c0_i32_0 = arith.constant 0 : i32
    %c0_i32_1 = arith.constant 0 : i32
    return %c0_i32, %c0_i32_0 : i32, i32
  }
  func.func @transform_3(%arg0: i32) -> (i32, i32) {
    %c0_i32 = arith.constant 0 : i32
    %c0_i32_0 = arith.constant 0 : i32
    return %arg0, %c0_i32 : i32, i32
  }
}

</mosaic_0001>

<bundles_post_ra>
// kernel: edgeconv1_forward.7
= control target key start
LH: loop header
LB: loop body
LE: loop exit
PB: predicated region body
PF: predicated region fallthrough
CT: control target
= control target key end

     0   :  { %s589_s12 = smov 0   ;;  %s624_s0 = inlined_call_operand.vmem [shape: bf16[256,128], index: 0, kind: input, shape index: {}]   ;;  %s625_s1 = inlined_call_operand.vmem [shape: f32[1,128], index: 1, kind: input, shape index: {}]   ;;  %s626_s2 = inlined_call_operand.vmem [shape: f32[1,128], index: 2, kind: input, shape index: {}]   ;;  %s627_s3 = inlined_call_operand.vmem [shape: f32[16,128], index: 3, kind: output, shape index: {}]  }
   0x1 LB: > { %s595_s13 = sadd.s32 4294967295, %s567_s12   ;;  %p474_p0 = scmp.ge.s32.totalorder %s567_s12, 1  ;;  %s567_s12 = sphi %s589_s12, %s13_s12  }
   0x2   : > { %p138_p1 = scmp.lt.s32.totalorder %s567_s12, 3 }
   0x4   : > { %p139_p2 = pnand %p474_p0, %p138_p1 }
   0x5   : > { %s475_s14 = sshll.u32 (!%p139_p2), %s595_s13, 4  ;;  %p167_p4 = scmp.lt.s32.totalorder (!%p139_p2), %s595_s13, 1 }
   0x6   : > { %142 = sbr.rel (%p139_p2) target bundleno = 76 (0x4c), region = 32  ;;  %p162_p3 = scmp.lt.s32.totalorder (!%p139_p2), %s475_s14, 31 }
   0xb   : > { %s629_s14 = smov (!%p162_p3, %s475_s14), 31  ;;  %v478_v6 = vld [vmem:[%s625_s1] ss:$0 sm:$0xff]  ;;  %vm401_vm0 = vcmask 1041409   ;;  %vm403_vm1 = vcmask 1042434   ;;  %vm405_vm2 = vcmask 1043459  }
   0xc   : > { %s476_s15 = sshll.u32 %s629_s14, 2  ;;  %v479_v17 = vld [vmem:[%s626_s2] ss:$0 sm:$0xff]  ;;  %s631_s13 = smov (!%p167_p4, %s595_s13), 1  ;;  %vm407_vm3 = vcmask 1044484   ;;  %vm409_vm4 = vcmask 1045509  }
   0xd   : > { %s165_s18 = scalar_lea.vmem %s624_s0, %s476_s15  ;;  %s477_s23 = sshll.u32 %s631_s13, 3  ;;  %vm411_vm5 = vcmask 1046534   ;;  %vm413_vm6 = vcmask 1047559  }
   0xe   : > { %v483_v0 = vld [vmem:[%s165_s18] sm:$0xff]   ;;  %v514_v1 = vld [vmem:[%s165_s18 + $0x8] sm:$0xff]   ;;  %v515_v2 = vld [vmem:[%s165_s18 + $0x10] sm:$0xff]   ;;  %s170_s26 = scalar_lea.vmem %s627_s3, %s477_s23 }
   0xf   : > { %v484_v3 = vunpack.c.l.bf16 %v483_v0  ;;  %v485_v4 = vunpack.c.h.bf16 %v483_v0  ;;  %v488_v5 = vunpack.c.l.bf16 %v514_v1  ;;  %v489_v7 = vunpack.c.h.bf16 %v514_v1  ;;  %v516_v8 = vld [vmem:[%s165_s18 + $0x18] sm:$0xff]   ;;  %v517_v11 = vld [vmem:[%s165_s18 + $0x20] sm:$0xff]   ;;  %v518_v13 = vld [vmem:[%s165_s18 + $0x28] sm:$0xff]  }
  0x10   : > { %v492_v9 = vunpack.c.l.bf16 %v515_v2  ;;  %v493_v10 = vunpack.c.h.bf16 %v515_v2  ;;  %v496_v12 = vunpack.c.l.bf16 %v516_v8  ;;  %v497_v18 = vunpack.c.h.bf16 %v516_v8  ;;  %v519_v24 = vld [vmem:[%s165_s18 + $0x30] sm:$0xff]   ;;  %v520_v26 = vld [vmem:[%s165_s18 + $0x38] sm:$0xff]  }
  0x11   : > { %v211_v14 = vmul.f32 %v484_v3, %v478_v6  ;;  %v212_v15 = vmul.f32 %v485_v4, %v478_v6  ;;  %v213_v16 = vmul.f32 %v488_v5, %v478_v6  ;;  %v214_v19 = vmul.f32 %v489_v7, %v478_v6 }
  0x12   : > { %v500_v20 = vunpack.c.l.bf16 %v517_v11  ;;  %v215_v21 = vmul.f32 %v492_v9, %v478_v6  ;;  %v501_v22 = vunpack.c.h.bf16 %v517_v11  ;;  %v504_v23 = vunpack.c.l.bf16 %v518_v13 }
  0x13   : > { %v216_v25 = vmul.f32 %v493_v10, %v478_v6  ;;  %v217_v27 = vmul.f32 %v496_v12, %v478_v6  ;;  %v233_v28 = vadd.f32 %v479_v17, %v211_v14  ;;  %v234_v29 = vadd.f32 %v479_v17, %v212_v15 }
  0x14   : > { %v235_v30 = vadd.f32 %v479_v17, %v213_v16  ;;  %v505_v31 = vunpack.c.h.bf16 %v518_v13  ;;  %v218_v32 = vmul.f32 %v497_v18, %v478_v6  ;;  %v236_v33 = vadd.f32 %v479_v17, %v214_v19 }
  0x15   : > { %v508_v34 = vunpack.c.l.bf16 %v519_v24  ;;  %v509_v35 = vunpack.c.h.bf16 %v519_v24  ;;  %v219_v36 = vmul.f32 %v500_v20, %v478_v6  ;;  %v237_v37 = vadd.f32 %v479_v17, %v215_v21 }
  0x16   : > { %v512_v38 = vunpack.c.l.bf16 %v520_v26  ;;  %v220_v39 = vmul.f32 %v501_v22, %v478_v6  ;;  %v221_v40 = vmul.f32 %v504_v23, %v478_v6  ;;  %v238_v41 = vadd.f32 %v479_v17, %v216_v25 }
  0x17   : > { %v239_v42 = vadd.f32 %v479_v17, %v217_v27  ;;  %v265_v43 = vmul.f32 0.70710677, %v233_v28  ;;  %v266_v44 = vmul.f32 0.70710677, %v234_v29  ;;  %v267_v45 = vmul.f32 0.70710677, %v235_v30 }
  0x18   : > { %v513_v46 = vunpack.c.h.bf16 %v520_v26  ;;  %v222_v47 = vmul.f32 %v505_v31, %v478_v6  ;;  %v240_v48 = vadd.f32 %v479_v17, %v218_v32  ;;  %v268_v49 = vmul.f32 0.70710677, %v236_v33 }
  0x19   : > { %v223_v50 = vmul.f32 %v508_v34, %v478_v6  ;;  %v241_v51 = vadd.f32 %v479_v17, %v219_v36  ;;  %v269_v52 = vmul.f32 0.70710677, %v237_v37  ;;  %529 = verf.f32 %v265_v43 }
  0x1a   : > { %v224_v53 = vmul.f32 %v509_v35, %v478_v6  ;;  %v242_v54 = vadd.f32 %v479_v17, %v220_v39  ;;  %v270_v55 = vmul.f32 0.70710677, %v238_v41  ;;  %531 = verf.f32 %v266_v44 }
  0x1b   : > { %v225_v56 = vmul.f32 %v512_v38, %v478_v6  ;;  %v243_v57 = vadd.f32 %v479_v17, %v221_v40  ;;  %v271_v58 = vmul.f32 0.70710677, %v239_v42  ;;  %533 = verf.f32 %v267_v45 }
  0x1c   : > { %v226_v59 = vmul.f32 %v513_v46, %v478_v6  ;;  %v244_v60 = vadd.f32 %v479_v17, %v222_v47  ;;  %v272_v61 = vmul.f32 0.70710677, %v240_v48  ;;  %535 = verf.f32 %v268_v49 }
  0x1d   : > { %v245_v62 = vadd.f32 %v479_v17, %v223_v50  ;;  %v273_v63 = vmul.f32 0.70710677, %v241_v51  ;;  %537 = verf.f32 %v269_v52  ;;  %v246_v0 = vadd.f32 %v479_v17, %v224_v53 }
  0x1e   : > { %v274_v1 = vmul.f32 0.70710677, %v242_v54  ;;  %539 = verf.f32 %v270_v55  ;;  %v247_v2 = vadd.f32 %v479_v17, %v225_v56  ;;  %v275_v3 = vmul.f32 0.70710677, %v243_v57 }
  0x1f   : > { %541 = verf.f32 %v271_v58  ;;  %v609_v4 = vadd.f32 %v479_v17, %v226_v59  ;;  %v276_v5 = vmul.f32 0.70710677, %v244_v60  ;;  %v277_v7 = vmul.f32 0.70710677, %v245_v62 }
  0x20   : > { %543 = verf.f32 %v272_v61  ;;  %v278_v8 = vmul.f32 0.70710677, %v246_v0  ;;  %v279_v6 = vmul.f32 0.70710677, %v247_v2  ;;  %v249_v10 = vmul.f32 0.5, %v233_v28 }
  0x21   : > { %545 = verf.f32 %v273_v63  ;;  %v280_v9 = vmul.f32 0.70710677, %v609_v4  ;;  %v250_v12 = vmul.f32 0.5, %v234_v29  ;;  %v251_v14 = vmul.f32 0.5, %v235_v30 }
  0x22   : > { %547 = verf.f32 %v274_v1  ;;  %v252_v17 = vmul.f32 0.5, %v236_v33  ;;  %v253_v20 = vmul.f32 0.5, %v237_v37  ;;  %v254_v21 = vmul.f32 0.5, %v238_v41 }
  0x23   : > { %549 = verf.f32 %v275_v3  ;;  %v255_v25 = vmul.f32 0.5, %v239_v42  ;;  %v256_v26 = vmul.f32 0.5, %v240_v48  ;;  %v257_v31 = vmul.f32 0.5, %v241_v51 }
  0x24   : > { %551 = verf.f32 %v276_v5  ;;  %v258_v32 = vmul.f32 0.5, %v242_v54  ;;  %v259_v36 = vmul.f32 0.5, %v243_v57  ;;  %v260_v37 = vmul.f32 0.5, %v244_v60 }
  0x25   : > { %553 = verf.f32 %v277_v7  ;;  %v261_v41 = vmul.f32 0.5, %v245_v62  ;;  %v262_v50 = vmul.f32 0.5, %v246_v0  ;;  %v263_v51 = vmul.f32 0.5, %v247_v2 }
  0x26   : > { %v530_v11 = vpop.eup %529  ;;  %555 = verf.f32 %v278_v8  ;;  %v264_v60 = vmul.f32 0.5, %v609_v4 }
  0x27   : > { %v532_v13 = vpop.eup %531  ;;  %557 = verf.f32 %v279_v6  ;;  %v297_v15 = vadd.f32 1.0, %v530_v11 }
  0x28   : > { %v534_v16 = vpop.eup %533  ;;  %559 = verf.f32 %v280_v9  ;;  %v298_v18 = vadd.f32 1.0, %v532_v13 }
  0x29   : > { %v536_v19 = vpop.eup %535  ;;  %v299_v22 = vadd.f32 1.0, %v534_v16  ;;  %v313_v23 = vmul.f32 %v297_v15, %v249_v10 }
  0x2a   : > { %v538_v24 = vpop.eup %537  ;;  %v300_v27 = vadd.f32 1.0, %v536_v19  ;;  %v314_v28 = vmul.f32 %v298_v18, %v250_v12 }
  0x2b   : > { %v540_v29 = vpop.eup %539  ;;  %v301_v30 = vadd.f32 1.0, %v538_v24  ;;  %v315_v34 = vmul.f32 %v299_v22, %v251_v14 }
  0x2c   : > { %v542_v35 = vpop.eup %541  ;;  %v302_v33 = vadd.f32 1.0, %v540_v29  ;;  %v316_v38 = vmul.f32 %v300_v27, %v252_v17  ;;  %v329_v39 = vadd.f32 %v314_v28, %v313_v23 }
  0x2d   : > { %v544_v40 = vpop.eup %543  ;;  %v303_v43 = vadd.f32 1.0, %v542_v35  ;;  %v317_v44 = vmul.f32 %v301_v30, %v253_v20 }
  0x2e   : > { %v546_v45 = vpop.eup %545  ;;  %v304_v42 = vadd.f32 1.0, %v544_v40  ;;  %v318_v46 = vmul.f32 %v302_v33, %v254_v21  ;;  %v330_v47 = vrot.slane %v329_v39, 4  ;;  %v336_v48 = vadd.f32 %v316_v38, %v315_v34 }
  0x2f   : > { %v548_v49 = vpop.eup %547  ;;  %v305_v52 = vadd.f32 1.0, %v546_v45  ;;  %v319_v53 = vmul.f32 %v303_v43, %v255_v25 }
  0x30   : > { %v550_v54 = vpop.eup %549  ;;  %v306_v55 = vadd.f32 1.0, %v548_v49  ;;  %v320_v56 = vmul.f32 %v304_v42, %v256_v26  ;;  %v331_v57 = vadd.f32 %v330_v47, %v329_v39  ;;  %v337_v58 = vrot.slane %v336_v48, 4 }
  0x31   : > { %v552_v59 = vpop.eup %551  ;;  %v307_v61 = vadd.f32 1.0, %v550_v54  ;;  %v321_v62 = vmul.f32 %v305_v52, %v257_v31  ;;  %v343_v63 = vadd.f32 %v318_v46, %v317_v44 }
  0x32   : > { %v554_v1 = vpop.eup %553  ;;  %v308_v3 = vadd.f32 1.0, %v552_v59  ;;  %v322_v5 = vmul.f32 %v306_v55, %v258_v32  ;;  %v332_v7 = vrot.slane %v331_v57, 2  ;;  %v338_v8 = vadd.f32 %v337_v58, %v336_v48 }
  0x33   : > { %v556_v0 = vpop.eup %555  ;;  %v309_v2 = vadd.f32 1.0, %v554_v1  ;;  %v323_v6 = vmul.f32 %v307_v61, %v259_v36  ;;  %v344_v9 = vrot.slane %v343_v63, 4  ;;  %v350_v10 = vadd.f32 %v320_v56, %v319_v53 }
  0x34   : > { %v558_v11 = vpop.eup %557  ;;  %v310_v12 = vadd.f32 1.0, %v556_v0  ;;  %v324_v13 = vmul.f32 %v308_v3, %v260_v37  ;;  %v333_v14 = vadd.f32 %v332_v7, %v331_v57  ;;  %v339_v15 = vrot.slane %v338_v8, 2 }
  0x35   : > { %v560_v4 = vpop.eup %559  ;;  %v311_v16 = vadd.f32 1.0, %v558_v11  ;;  %v325_v17 = vmul.f32 %v309_v2, %v261_v41  ;;  %v345_v18 = vadd.f32 %v344_v9, %v343_v63  ;;  %v351_v19 = vrot.slane %v350_v10, 4 }
  0x36   : > { %v312_v20 = vadd.f32 1.0, %v560_v4  ;;  %v326_v21 = vmul.f32 %v310_v12, %v262_v50  ;;  %v334_v22 = vrot.slane %v333_v14, 1  ;;  %v340_v23 = vadd.f32 %v339_v15, %v338_v8 }
  0x37   : > { %v327_v24 = vmul.f32 %v311_v16, %v263_v51  ;;  %v346_v25 = vrot.slane %v345_v18, 2  ;;  %v352_v26 = vadd.f32 %v351_v19, %v350_v10  ;;  %v357_v27 = vadd.f32 %v322_v5, %v321_v62 }
  0x38   : > { %v328_v28 = vmul.f32 %v312_v20, %v264_v60  ;;  %v335_v29 = vadd.f32 %v334_v22, %v333_v14  ;;  %v341_v31 = vrot.slane %v340_v23, 1  ;;  %v364_v32 = vadd.f32 %v324_v13, %v323_v6 }
  0x39   : > { %v347_v30 = vadd.f32 %v346_v25, %v345_v18  ;;  %v353_v34 = vrot.slane %v352_v26, 2  ;;  %v358_v35 = vrot.slane %v357_v27, 4  ;;  %v371_v36 = vadd.f32 %v326_v21, %v325_v17 }
  0x3a   : > { %v342_v33 = vadd.f32 %v341_v31, %v340_v23  ;;  %v365_v38 = vrot.slane %v364_v32, 4  ;;  %v378_v39 = vadd.f32 %v328_v28, %v327_v24  ;;  %v385_v40 = vmul.f32 0.0625, %v335_v29 }
  0x3b   : > { %v348_v37 = vrot.slane %v347_v30, 1  ;;  %v354_v41 = vadd.f32 %v353_v34, %v352_v26  ;;  %v359_v43 = vadd.f32 %v358_v35, %v357_v27  ;;  %v372_v44 = vrot.slane %v371_v36, 4 }
  0x3c   : > { %v366_v45 = vadd.f32 %v365_v38, %v364_v32  ;;  %v379_v42 = vrot.slane %v378_v39, 4  ;;  %v386_v46 = vmul.f32 0.0625, %v342_v33 }
  0x3d   : > { %v349_v47 = vadd.f32 %v348_v37, %v347_v30  ;;  %v355_v48 = vrot.slane %v354_v41, 1  ;;  %v360_v49 = vrot.slane %v359_v43, 2  ;;  %v373_v50 = vadd.f32 %v372_v44, %v371_v36 }
  0x3e   : > { %v367_v51 = vrot.slane %v366_v45, 2  ;;  %v380_v52 = vadd.f32 %v379_v42, %v378_v39  ;;  %v402_v53 = vsel %vm401_vm0, %v386_v46, %v385_v40 }
  0x3f   : > { %v356_v54 = vadd.f32 %v355_v48, %v354_v41  ;;  %v361_v55 = vadd.f32 %v360_v49, %v359_v43  ;;  %v374_v56 = vrot.slane %v373_v50, 2  ;;  %v387_v57 = vmul.f32 0.0625, %v349_v47 }
  0x40   : > { %v368_v58 = vadd.f32 %v367_v51, %v366_v45  ;;  %v381_v59 = vrot.slane %v380_v52, 2 }
  0x41   : > { %v362_v60 = vrot.slane %v361_v55, 1  ;;  %v375_v61 = vadd.f32 %v374_v56, %v373_v50  ;;  %v388_v62 = vmul.f32 0.0625, %v356_v54  ;;  %v404_v63 = vsel %vm403_vm1, %v387_v57, %v402_v53 }
  0x42   : > { %v369_v1 = vrot.slane %v368_v58, 1  ;;  %v382_v3 = vadd.f32 %v381_v59, %v380_v52 }
  0x43   : > { %v363_v5 = vadd.f32 %v362_v60, %v361_v55  ;;  %v376_v7 = vrot.slane %v375_v61, 1  ;;  %v406_v2 = vsel %vm405_vm2, %v388_v62, %v404_v63 }
  0x44   : > { %v370_v8 = vadd.f32 %v369_v1, %v368_v58  ;;  %v383_v0 = vrot.slane %v382_v3, 1 }
  0x45   : > { %v377_v6 = vadd.f32 %v376_v7, %v375_v61  ;;  %v389_v9 = vmul.f32 0.0625, %v363_v5 }
  0x46   : > { %v384_v10 = vadd.f32 %v383_v0, %v382_v3  ;;  %v390_v11 = vmul.f32 0.0625, %v370_v8 }
  0x47   : > { %v391_v12 = vmul.f32 0.0625, %v377_v6  ;;  %v408_v13 = vsel %vm407_vm3, %v389_v9, %v406_v2 }
  0x48   : > { %v392_v14 = vmul.f32 0.0625, %v384_v10  ;;  %v410_v15 = vsel %vm409_vm4, %v390_v11, %v408_v13 }
  0x49   : > { %v412_v4 = vsel %vm411_vm5, %v391_v12, %v410_v15 }
  0x4a   : > { %v414_v16 = vsel %vm413_vm6, %v392_v14, %v412_v4 }
  0x4b   : > { %416 = vst [vmem:[%s170_s26] sm:$0xff] %v414_v16 }
  0x4c PF: > { %s13_s12 = sadd.s32 1, %s567_s12  }
  0x4d   : > { %p10_p5 = scmp.ge.s32.totalorder %s13_s12, 4  }
  0x4f   :  { %12 = sbr.rel (!%p10_p5) target bundleno = 1 (0x1), region = 62 }

// kernel: edgeconv1_forward.4
= control target key start
LH: loop header
LB: loop body
LE: loop exit
PB: predicated region body
PF: predicated region fallthrough
CT: control target
= control target key end

     0   :  { %s829_s12 = smov 0   ;;  %s875_s0 = inlined_call_operand.vmem [shape: bf16[256,16], index: 0, kind: input, shape index: {}]   ;;  %s876_s1 = inlined_call_operand.vmem [shape: bf16[16,128], index: 1, kind: input, shape index: {}]   ;;  %s877_s2 = inlined_call_operand.vmem [shape: bf16[256,128], index: 2, kind: output, shape index: {0}]   ;;  %s878_s3 = inlined_call_operand.vmem [shape: f32[2,2,128], index: 3, kind: output, shape index: {1}]  }
   0x1 LB: > { %s835_s13 = sadd.s32 4294967295, %s807_s12   ;;  %p650_p0 = scmp.ge.s32.totalorder %s807_s12, 1  ;;  %s807_s12 = sphi %s829_s12, %s14_s12  }
   0x2   : > { %p141_p1 = scmp.lt.s32.totalorder %s807_s12, 3 }
   0x4   : > { %p142_p2 = pnand %p650_p0, %p141_p1 }
   0x5   : > { %s651_s16 = sshll.u32 (!%p142_p2), %s835_s13, 4  ;;  %p181_p4 = scmp.lt.s32.totalorder (!%p142_p2), %s835_s13, 1 }
   0x6   : > { %145 = sbr.rel (%p142_p2) target bundleno = 247 (0xf7), region = 28  ;;  %p170_p3 = scmp.lt.s32.totalorder (!%p142_p2), %s651_s16, 31 }
   0xb   : > { %v792_v0 = vld [vmem:[%s876_s1] sm:$0xff]   ;;  %s880_s16 = smov (!%p170_p3, %s651_s16), 31  ;;  %vm222_vm0 = vcmask 130048   ;;  %s882_s13 = smov (!%p181_p4, %s835_s13), 1 }
   0xc   : > { %764 = vmatprep.subr.bf16.mxu0 %v792_v0  ;;  %774 = vmatprep.subr.bf16.mxu1 %v792_v0  ;;  %s652_s17 = sshll.u32 %s880_s16, 2  ;;  %s655_s24 = sshll.u32 %s882_s13, 1 }
   0xd   : > { %765 = vmatpush3.bf16.msra.mxu0 %v792_v0  ;;  %775 = vmatpush3.bf16.msra.mxu1 %v792_v0  ;;  %s173_s20 = scalar_lea.vmem %s875_s0, %s652_s17  ;;  %s857_s23 = scalar_lea.vmem %s877_s2, %s652_s17 }
   0xe   : > { %v793_v1 = vld [vmem:[%s173_s20] sm:$0xff]   ;;  %v795_v3 = vld [vmem:[%s173_s20 + $0x8] sm:$0xff]   ;;  %v797_v5 = vld [vmem:[%s173_s20 + $0x10] sm:$0xff]   ;;  %s184_s27 = scalar_lea.vmem %s878_s3, %s655_s24 }
   0xf   : > { %v794_v2 = vld [vmem:[%s173_s20 + $0x20] sm:$0xff]   ;;  %766 = vmatprep.mubr.msk.bf16.mxu0 %vm222_vm0, %v793_v1  ;;  %v796_v4 = vld [vmem:[%s173_s20 + $0x28] sm:$0xff]   ;;  %v798_v6 = vld [vmem:[%s173_s20 + $0x30] sm:$0xff]  }
  0x10   : > { %776 = vmatprep.mubr.msk.bf16.mxu1 %vm222_vm0, %v794_v2  ;;  %767 = vmatmul.mubr.msk.bf16.vlgmr.msra.gmra.mxu0 %vm222_vm0, %v795_v3  ;;  %v799_v7 = vld [vmem:[%s173_s20 + $0x18] sm:$0xff]  }
  0x11   : > { %777 = vmatmul.mubr.msk.bf16.vlgmr.msra.gmra.mxu1 %vm222_vm0, %v796_v4  ;;  %770 = vmatprep.mubr.msk.bf16.mxu0 %vm222_vm0, %v797_v5  ;;  %v800_v8 = vld [vmem:[%s173_s20 + $0x38] sm:$0xff]  }
  0x12   : > { %780 = vmatprep.mubr.msk.bf16.mxu1 %vm222_vm0, %v798_v6 }
  0x18   : > { %771 = vmatmul.mubr.msk.bf16.gmra.mxu0 %vm222_vm0, %v799_v7 }
  0x19   : > { %781 = vmatmul.mubr.msk.bf16.gmra.mxu1 %vm222_vm0, %v800_v8 }
  0xd0   : > { %v768_v9 = vpop.f32.mrf.mxu0 }
  0xd1   : > { %v778_v10 = vpop.f32.mrf.mxu1  ;;  %v356_v28 = vmul.f32 %v768_v9, %v768_v9 }
  0xd2   : > { %v269_v11 = vpop.f32.mrf.mxu0  ;;  %v537_v32 = vmul.f32 %v778_v10, %v778_v10 }
  0xd3   : > { %v450_v12 = vpop.f32.mrf.mxu1  ;;  %v354_v18 = vmul.f32 %v269_v11, %v269_v11 }
  0xd4   : > { %v769_v13 = vpop.f32.mrf.mxu0  ;;  %v535_v23 = vmul.f32 %v450_v12, %v450_v12 }
  0xd5   : > { %v715_v14 = vpack.c.bf16 %v769_v13, %v768_v9  ;;  %v779_v15 = vpop.f32.mrf.mxu1  ;;  %v357_v36 = vmul.f32 %v769_v13, %v769_v13 }
  0xd6   : > { %v735_v16 = vpack.c.bf16 %v779_v15, %v778_v10  ;;  %v272_v17 = vpop.f32.mrf.mxu0  ;;  %v538_v40 = vmul.f32 %v779_v15, %v779_v15 }
  0xd7   : > { %747 = vst [vmem:[%s857_s23 + $0x8] sm:$0xff] %v715_v14   ;;  %v710_v19 = vpack.c.bf16 %v272_v17, %v269_v11  ;;  %v340_v20 = vadd.f32 %v272_v17, %v269_v11  ;;  %v355_v21 = vmul.f32 %v272_v17, %v272_v17  ;;  %v453_v22 = vpop.f32.mrf.mxu1 }
  0xd8   : > { %751 = vst [vmem:[%s857_s23 + $0x28] sm:$0xff] %v735_v16   ;;  %v730_v24 = vpack.c.bf16 %v453_v22, %v450_v12  ;;  %v521_v25 = vadd.f32 %v453_v22, %v450_v12  ;;  %v536_v26 = vmul.f32 %v453_v22, %v453_v22  ;;  %v772_v27 = vpop.f32.mrf.mxu0 }
  0xd9   : > { %711 = vst [vmem:[%s857_s23] sm:$0xff] %v710_v19   ;;  %v341_v29 = vadd.f32 %v768_v9, %v340_v20  ;;  %v362_v30 = vadd.f32 %v355_v21, %v354_v18  ;;  %v782_v31 = vpop.f32.mrf.mxu1  ;;  %v360_v63 = vmul.f32 %v772_v27, %v772_v27 }
  0xda   : > { %750 = vst [vmem:[%s857_s23 + $0x20] sm:$0xff] %v730_v24   ;;  %v522_v33 = vadd.f32 %v778_v10, %v521_v25  ;;  %v543_v34 = vadd.f32 %v536_v26, %v535_v23  ;;  %v285_v35 = vpop.f32.mrf.mxu0  ;;  %v541_v2 = vmul.f32 %v782_v31, %v782_v31 }
  0xdb   : > { %v363_v37 = vadd.f32 %v362_v30, %v356_v28  ;;  %v342_v38 = vadd.f32 %v769_v13, %v341_v29  ;;  %v466_v39 = vpop.f32.mrf.mxu1  ;;  %v358_v45 = vmul.f32 %v285_v35, %v285_v35 }
  0xdc   : > { %v544_v41 = vadd.f32 %v543_v34, %v537_v32  ;;  %v523_v42 = vadd.f32 %v779_v15, %v522_v33  ;;  %v773_v43 = vpop.f32.mrf.mxu0  ;;  %v539_v50 = vmul.f32 %v466_v39, %v466_v39 }
  0xdd   : > { %v343_v44 = vadd.f32 %v342_v38, %v285_v35  ;;  %v364_v46 = vadd.f32 %v363_v37, %v357_v36  ;;  %v725_v47 = vpack.c.bf16 %v773_v43, %v772_v27  ;;  %v783_v48 = vpop.f32.mrf.mxu1  ;;  %v361_v5 = vmul.f32 %v773_v43, %v773_v43 }
  0xde   : > { %v524_v49 = vadd.f32 %v523_v42, %v466_v39  ;;  %v545_v51 = vadd.f32 %v544_v41, %v538_v40  ;;  %v745_v52 = vpack.c.bf16 %v783_v48, %v782_v31  ;;  %v288_v53 = vpop.f32.mrf.mxu0  ;;  %v542_v8 = vmul.f32 %v783_v48, %v783_v48 }
  0xdf   : > { %v365_v54 = vadd.f32 %v364_v46, %v358_v45  ;;  %749 = vst [vmem:[%s857_s23 + $0x18] sm:$0xff] %v725_v47   ;;  %v720_v55 = vpack.c.bf16 %v288_v53, %v285_v35  ;;  %v344_v56 = vadd.f32 %v343_v44, %v288_v53  ;;  %v359_v57 = vmul.f32 %v288_v53, %v288_v53  ;;  %v469_v58 = vpop.f32.mrf.mxu1 }
  0xe0   : > { %v546_v59 = vadd.f32 %v545_v51, %v539_v50  ;;  %753 = vst [vmem:[%s857_s23 + $0x38] sm:$0xff] %v745_v52   ;;  %v740_v60 = vpack.c.bf16 %v469_v58, %v466_v39  ;;  %v525_v61 = vadd.f32 %v524_v49, %v469_v58  ;;  %v540_v62 = vmul.f32 %v469_v58, %v469_v58 }
  0xe1   : > { %748 = vst [vmem:[%s857_s23 + $0x10] sm:$0xff] %v720_v55   ;;  %v345_v0 = vadd.f32 %v772_v27, %v344_v56  ;;  %v366_v1 = vadd.f32 %v365_v54, %v359_v57 }
  0xe2   : > { %752 = vst [vmem:[%s857_s23 + $0x30] sm:$0xff] %v740_v60   ;;  %v526_v3 = vadd.f32 %v782_v31, %v525_v61  ;;  %v547_v4 = vadd.f32 %v546_v59, %v540_v62 }
  0xe3   : > { %v346_v6 = vadd.f32 %v773_v43, %v345_v0  ;;  %v367_v7 = vadd.f32 %v366_v1, %v360_v63 }
  0xe4   : > { %v527_v9 = vadd.f32 %v783_v48, %v526_v3  ;;  %v548_v10 = vadd.f32 %v547_v4, %v541_v2 }
  0xe5   : > { %v347_v11 = vrot.slane %v346_v6, 4  ;;  %v368_v12 = vadd.f32 %v367_v7, %v361_v5 }
  0xe6   : > { %v528_v13 = vrot.slane %v527_v9, 4  ;;  %v549_v14 = vadd.f32 %v548_v10, %v542_v8 }
  0xe7   : > { %v348_v15 = vadd.f32 %v347_v11, %v346_v6  ;;  %v369_v16 = vrot.slane %v368_v12, 4 }
  0xe8   : > { %v529_v17 = vadd.f32 %v528_v13, %v527_v9  ;;  %v550_v18 = vrot.slane %v549_v14, 4 }
  0xe9   : > { %v349_v19 = vrot.slane %v348_v15, 2  ;;  %v370_v20 = vadd.f32 %v369_v16, %v368_v12 }
  0xea   : > { %v530_v21 = vrot.slane %v529_v17, 2  ;;  %v551_v22 = vadd.f32 %v550_v18, %v549_v14 }
  0xeb   : > { %v350_v23 = vadd.f32 %v349_v19, %v348_v15  ;;  %v371_v24 = vrot.slane %v370_v20, 2 }
  0xec   : > { %v531_v25 = vadd.f32 %v530_v21, %v529_v17  ;;  %v552_v26 = vrot.slane %v551_v22, 2 }
  0xed   : > { %v351_v27 = vrot.slane %v350_v23, 1  ;;  %v372_v28 = vadd.f32 %v371_v24, %v370_v20 }
  0xee   : > { %v532_v29 = vrot.slane %v531_v25, 1  ;;  %v553_v30 = vadd.f32 %v552_v26, %v551_v22 }
  0xef   : > { %v352_v31 = vadd.f32 %v351_v27, %v350_v23  ;;  %v373_v32 = vrot.slane %v372_v28, 1 }
  0xf0   : > { %v533_v33 = vadd.f32 %v532_v29, %v531_v25  ;;  %v554_v34 = vrot.slane %v553_v30, 1 }
  0xf1   : > { %v374_v35 = vadd.f32 %v373_v32, %v372_v28 }
  0xf2   : > { %v534_v36 = vadd.f32 %v533_v33, %v352_v31  ;;  %v555_v37 = vadd.f32 %v554_v34, %v553_v30 }
  0xf4   : > { %v556_v38 = vadd.f32 %v555_v37, %v374_v35  ;;  %557 = vst [vmem:[%s184_s27] sm:$0x1] %v534_v36 }
  0xf6   : > { %558 = vst [vmem:[%s184_s27 + $0x1] sm:$0x1] %v556_v38 }
  0xf7 PF: > { %s14_s12 = sadd.s32 1, %s807_s12  }
  0xf8   : > { %p11_p5 = scmp.ge.s32.totalorder %s14_s12, 4  }
  0xfa   :  { %13 = sbr.rel (!%p11_p5) target bundleno = 1 (0x1), region = 70 }

// kernel: edgeconv1_forward.5
= control target key start
LH: loop header
LB: loop body
LE: loop exit
PB: predicated region body
PF: predicated region fallthrough
CT: control target
= control target key end

     0   :  { %s1139_s18 = smov 0   ;;  %s1321_s0 = inlined_call_operand.vmem [shape: bf16[256,128], index: 0, kind: input, shape index: {}]   ;;  %s1322_s1 = inlined_call_operand.vmem [shape: bf16[128,128], index: 1, kind: input, shape index: {}]   ;;  %s1323_s2 = inlined_call_operand.vmem [shape: f32[1,128], index: 2, kind: input, shape index: {}]   ;;  %s1324_s3 = inlined_call_operand.vmem [shape: f32[1,128], index: 3, kind: input, shape index: {}]   ;;  %s1325_s4 = inlined_call_operand.vmem [shape: bf16[256,128], index: 4, kind: output, shape index: {0}]   ;;  %s1326_s5 = inlined_call_operand.vmem [shape: f32[2,2,128], index: 5, kind: output, shape index: {1}]  }
   0x1 LB: > { %s1145_s19 = sadd.s32 4294967295, %s1107_s18   ;;  %p845_p0 = scmp.ge.s32.totalorder %s1107_s18, 1  ;;  %s1107_s18 = sphi %s1139_s18, %s16_s18  }
   0x2   : > { %p191_p1 = scmp.lt.s32.totalorder %s1107_s18, 3 }
   0x4   : > { %p192_p2 = pnand %p845_p0, %p191_p1 }
   0x5   : > { %s846_s22 = sshll.u32 (!%p192_p2), %s1145_s19, 4  ;;  %p235_p4 = scmp.lt.s32.totalorder (!%p192_p2), %s1145_s19, 1 }
   0x6   : > { %195 = sbr.rel (%p192_p2) target bundleno = 281 (0x119), region = 36  ;;  %p224_p3 = scmp.lt.s32.totalorder (!%p192_p2), %s846_s22, 31 }
   0xb   : > { %v1061_v0 = vld [vmem:[%s1322_s1 + $0x38] sm:$0xff]   ;;  %v1062_v1 = vld [vmem:[%s1322_s1 + $0x30] sm:$0xff]   ;;  %s1328_s22 = smov (!%p224_p3, %s846_s22), 31  ;;  %v1063_v2 = vld [vmem:[%s1322_s1 + $0x28] sm:$0xff]   ;;  %s1330_s19 = smov (!%p235_p4, %s1145_s19), 1 }
   0xc   : > { %1005 = vmatprep.subr.bf16.mxu0 %v1061_v0  ;;  %1029 = vmatprep.subr.bf16.mxu1 %v1061_v0  ;;  %s847_s27 = sshll.u32 %s1328_s22, 2  ;;  %v1064_v3 = vld [vmem:[%s1322_s1 + $0x20] sm:$0xff]   ;;  %v1065_v20 = vld [vmem:[%s1322_s1 + $0x18] sm:$0xff]   ;;  %v1066_v36 = vld [vmem:[%s1322_s1 + $0x10] sm:$0xff]   ;;  %s850_s22 = sshll.u32 %s1330_s19, 1 }
   0xd   : > { %1006 = vmatpush3.bf16.msra.mxu0 %v1061_v0  ;;  %1030 = vmatpush3.bf16.msra.mxu1 %v1061_v0  ;;  %s1167_s30 = scalar_lea.vmem %s1321_s0, %s847_s27  ;;  %v1175_v4 = vld [vmem:[%s1323_s2] ss:$0 sm:$0xff]  ;;  %v1067_v48 = vld [vmem:[%s1322_s1 + $0x8] sm:$0xff]   ;;  %s1303_s25 = scalar_lea.vmem %s1325_s4, %s847_s27 }
   0xe   : > { %1007 = vmatprep.subr.bf16.mxu0 %v1062_v1  ;;  %1031 = vmatprep.subr.bf16.mxu1 %v1062_v1  ;;  %v896_v5 = vld [vmem:[%s1167_s30] sm:$0xff]   ;;  %v967_v9 = vld [vmem:[%s1167_s30 + $0x8] sm:$0xff]   ;;  %v968_v24 = vld [vmem:[%s1167_s30 + $0x10] sm:$0xff]   ;;  %s238_s28 = scalar_lea.vmem %s1326_s5, %s850_s22 }
   0xf   : > { %v897_v6 = vunpack.c.l.bf16 %v896_v5  ;;  %v898_v7 = vunpack.c.h.bf16 %v896_v5  ;;  %v973_v8 = vld [vmem:[%s1167_s30 + $0x20] sm:$0xff]   ;;  %v974_v10 = vld [vmem:[%s1167_s30 + $0x28] sm:$0xff]   ;;  %v901_v14 = vunpack.c.l.bf16 %v967_v9  ;;  %v902_v15 = vunpack.c.h.bf16 %v967_v9  ;;  %v975_v46 = vld [vmem:[%s1167_s30 + $0x30] sm:$0xff]  }
  0x10   : > { %v1184_v11 = vld [vmem:[%s1324_s3] ss:$0 sm:$0xff]  ;;  %v933_v12 = vunpack.c.l.bf16 %v973_v8  ;;  %v934_v13 = vunpack.c.h.bf16 %v973_v8  ;;  %v937_v18 = vunpack.c.l.bf16 %v974_v10  ;;  %v938_v19 = vunpack.c.h.bf16 %v974_v10  ;;  %v969_v47 = vld [vmem:[%s1167_s30 + $0x18] sm:$0xff]  }
  0x11   : > { %1008 = vmatpush3.bf16.msra.mxu0 %v1062_v1  ;;  %1032 = vmatpush3.bf16.msra.mxu1 %v1062_v1  ;;  %v280_v16 = vmul.f32 %v897_v6, %v1175_v4  ;;  %v281_v17 = vmul.f32 %v898_v7, %v1175_v4  ;;  %v282_v23 = vmul.f32 %v901_v14, %v1175_v4  ;;  %v905_v35 = vunpack.c.l.bf16 %v968_v24  ;;  %v976_v58 = vld [vmem:[%s1167_s30 + $0x38] sm:$0xff]   ;;  %v1068_v59 = vld [vmem:[%s1322_s1] sm:$0xff]  }
  0x12   : > { %1009 = vmatprep.subr.bf16.mxu0 %v1063_v2  ;;  %1033 = vmatprep.subr.bf16.mxu1 %v1063_v2  ;;  %v551_v21 = vmul.f32 %v933_v12, %v1175_v4  ;;  %v552_v22 = vmul.f32 %v934_v13, %v1175_v4  ;;  %v283_v27 = vmul.f32 %v902_v15, %v1175_v4  ;;  %v906_v43 = vunpack.c.h.bf16 %v968_v24 }
  0x13   : > { %v1196_v25 = vadd.f32 %v1184_v11, %v280_v16  ;;  %v1199_v26 = vadd.f32 %v1184_v11, %v281_v17  ;;  %v553_v28 = vmul.f32 %v937_v18, %v1175_v4  ;;  %v1210_v31 = vadd.f32 %v1184_v11, %v282_v23 }
  0x14   : > { %v1204_v29 = vadd.f32 %v1184_v11, %v551_v21  ;;  %v1207_v30 = vadd.f32 %v1184_v11, %v552_v22  ;;  %v554_v32 = vmul.f32 %v938_v19, %v1175_v4  ;;  %v1221_v39 = vadd.f32 %v1184_v11, %v283_v27 }
  0x15   : > { %1010 = vmatpush3.bf16.msra.mxu0 %v1063_v2  ;;  %1034 = vmatpush3.bf16.msra.mxu1 %v1063_v2  ;;  %v310_v33 = vmul.f32 0.70710677, %v1196_v25  ;;  %v311_v34 = vmul.f32 0.70710677, %v1199_v26  ;;  %v312_v40 = vmul.f32 0.70710677, %v1210_v31  ;;  %v1225_v41 = vadd.f32 %v1184_v11, %v553_v28 }
  0x16   : > { %1011 = vmatprep.subr.bf16.mxu0 %v1064_v3  ;;  %1035 = vmatprep.subr.bf16.mxu1 %v1064_v3  ;;  %v575_v37 = vmul.f32 0.70710677, %v1204_v29  ;;  %v576_v38 = vmul.f32 0.70710677, %v1207_v30  ;;  %v1228_v42 = vadd.f32 %v1184_v11, %v554_v32  ;;  %v313_v44 = vmul.f32 0.70710677, %v1221_v39 }
  0x17   : > { %1069 = verf.f32 %v310_v33  ;;  %v284_v45 = vmul.f32 %v905_v35, %v1175_v4  ;;  %v577_v49 = vmul.f32 0.70710677, %v1225_v41  ;;  %v285_v51 = vmul.f32 %v906_v43, %v1175_v4 }
  0x18   : > { %1071 = verf.f32 %v311_v34  ;;  %v578_v50 = vmul.f32 0.70710677, %v1228_v42  ;;  %v941_v53 = vunpack.c.l.bf16 %v975_v46  ;;  %v942_v54 = vunpack.c.h.bf16 %v975_v46 }
  0x19   : > { %1012 = vmatpush3.bf16.msra.mxu0 %v1064_v3  ;;  %1036 = vmatpush3.bf16.msra.mxu1 %v1064_v3  ;;  %1073 = verf.f32 %v575_v37  ;;  %v1241_v52 = vadd.f32 %v1184_v11, %v284_v45  ;;  %v909_v55 = vunpack.c.l.bf16 %v969_v47  ;;  %v1244_v56 = vadd.f32 %v1184_v11, %v285_v51 }
  0x1a   : > { %1013 = vmatprep.subr.bf16.mxu0 %v1065_v20  ;;  %1037 = vmatprep.subr.bf16.mxu1 %v1065_v20  ;;  %1075 = verf.f32 %v576_v38  ;;  %v555_v60 = vmul.f32 %v941_v53, %v1175_v4  ;;  %v556_v61 = vmul.f32 %v942_v54, %v1175_v4  ;;  %v910_v62 = vunpack.c.h.bf16 %v969_v47 }
  0x1b   : > { %1077 = verf.f32 %v312_v40  ;;  %v314_v57 = vmul.f32 0.70710677, %v1241_v52  ;;  %v315_v63 = vmul.f32 0.70710677, %v1244_v56  ;;  %v286_v0 = vmul.f32 %v909_v55, %v1175_v4 }
  0x1c   : > { %1079 = verf.f32 %v313_v44  ;;  %v1256_v1 = vadd.f32 %v1184_v11, %v555_v60  ;;  %v1259_v2 = vadd.f32 %v1184_v11, %v556_v61  ;;  %v287_v3 = vmul.f32 %v910_v62, %v1175_v4 }
  0x1d   : > { %1014 = vmatpush3.bf16.msra.mxu0 %v1065_v20  ;;  %1038 = vmatpush3.bf16.msra.mxu1 %v1065_v20  ;;  %1081 = verf.f32 %v577_v49  ;;  %v945_v5 = vunpack.c.l.bf16 %v976_v58  ;;  %v1263_v6 = vadd.f32 %v1184_v11, %v286_v0  ;;  %v946_v7 = vunpack.c.h.bf16 %v976_v58 }
  0x1e   : > { %1015 = vmatprep.subr.bf16.mxu0 %v1066_v36  ;;  %1039 = vmatprep.subr.bf16.mxu1 %v1066_v36  ;;  %1083 = verf.f32 %v578_v50  ;;  %v579_v8 = vmul.f32 0.70710677, %v1256_v1  ;;  %v580_v9 = vmul.f32 0.70710677, %v1259_v2  ;;  %v302_v10 = vmul.f32 0.5, %v1196_v25 }
  0x1f   : > { %1085 = verf.f32 %v314_v57  ;;  %v1269_v12 = vadd.f32 %v1184_v11, %v287_v3  ;;  %v316_v13 = vmul.f32 0.70710677, %v1263_v6  ;;  %v557_v14 = vmul.f32 %v945_v5, %v1175_v4 }
  0x20   : > { %1087 = verf.f32 %v315_v63  ;;  %v303_v16 = vmul.f32 0.5, %v1199_v26  ;;  %v567_v17 = vmul.f32 0.5, %v1204_v29  ;;  %v558_v18 = vmul.f32 %v946_v7, %v1175_v4 }
  0x21   : > { %1016 = vmatpush3.bf16.msra.mxu0 %v1066_v36  ;;  %1040 = vmatpush3.bf16.msra.mxu1 %v1066_v36  ;;  %1089 = verf.f32 %v579_v8  ;;  %v568_v21 = vmul.f32 0.5, %v1207_v30  ;;  %v317_v22 = vmul.f32 0.70710677, %v1269_v12  ;;  %v1279_v25 = vadd.f32 %v1184_v11, %v557_v14 }
  0x22   : > { %1017 = vmatprep.subr.bf16.mxu0 %v1067_v48  ;;  %1041 = vmatprep.subr.bf16.mxu1 %v1067_v48  ;;  %1091 = verf.f32 %v580_v9  ;;  %v1282_v26 = vadd.f32 %v1184_v11, %v558_v18  ;;  %v304_v29 = vmul.f32 0.5, %v1210_v31  ;;  %v305_v34 = vmul.f32 0.5, %v1221_v39 }
  0x23   : > { %1093 = verf.f32 %v316_v13  ;;  %v569_v35 = vmul.f32 0.5, %v1225_v41  ;;  %v581_v40 = vmul.f32 0.70710677, %v1279_v25  ;;  %v570_v31 = vmul.f32 0.5, %v1228_v42 }
  0x24   : > { %v1070_v15 = vpop.eup %1069  ;;  %1095 = verf.f32 %v317_v22  ;;  %v582_v11 = vmul.f32 0.70710677, %v1282_v26  ;;  %v306_v39 = vmul.f32 0.5, %v1241_v52  ;;  %v307_v55 = vmul.f32 0.5, %v1244_v56 }
  0x25   : > { %1018 = vmatpush3.bf16.msra.mxu0 %v1067_v48  ;;  %1042 = vmatpush3.bf16.msra.mxu1 %v1067_v48  ;;  %v1072_v19 = vpop.eup %1071  ;;  %v326_v20 = vadd.f32 1.0, %v1070_v15  ;;  %1097 = verf.f32 %v581_v40  ;;  %v571_v52 = vmul.f32 0.5, %v1256_v1  ;;  %v572_v3 = vmul.f32 0.5, %v1259_v2 }
  0x26   : > { %1019 = vmatprep.subr.bf16.mxu0 %v1068_v59  ;;  %1043 = vmatprep.subr.bf16.mxu1 %v1068_v59  ;;  %v1074_v23 = vpop.eup %1073  ;;  %v327_v24 = vadd.f32 1.0, %v1072_v19  ;;  %1099 = verf.f32 %v582_v11  ;;  %v308_v56 = vmul.f32 0.5, %v1263_v6  ;;  %v309_v13 = vmul.f32 0.5, %v1269_v12 }
  0x27   : > { %v1076_v27 = vpop.eup %1075  ;;  %v334_v4 = vmul.f32 %v326_v20, %v302_v10  ;;  %v591_v28 = vadd.f32 1.0, %v1074_v23  ;;  %v573_v2 = vmul.f32 0.5, %v1279_v25  ;;  %v574_v6 = vmul.f32 0.5, %v1282_v26 }
  0x28   : > { %v1078_v32 = vpop.eup %1077  ;;  %v335_v30 = vmul.f32 %v327_v24, %v303_v16  ;;  %v592_v33 = vadd.f32 1.0, %v1076_v27 }
  0x29   : > { %1020 = vmatpush3.bf16.msra.mxu0 %v1068_v59  ;;  %1044 = vmatpush3.bf16.msra.mxu1 %v1068_v59  ;;  %v1080_v36 = vpop.eup %1079  ;;  %v599_v37 = vmul.f32 %v591_v28, %v567_v17  ;;  %v328_v38 = vadd.f32 1.0, %v1078_v32 }
  0x2a   : > { %v1082_v43 = vpop.eup %1081  ;;  %v342_v44 = vpack.c.bf16 %v335_v30, %v334_v4  ;;  %v600_v45 = vmul.f32 %v592_v33, %v568_v21  ;;  %v329_v46 = vadd.f32 1.0, %v1080_v36 }
  0x2b   : > { %v1084_v47 = vpop.eup %1083  ;;  %v336_v48 = vmul.f32 %v328_v38, %v304_v29  ;;  %v593_v49 = vadd.f32 1.0, %v1082_v43 }
  0x2c   : > { %v1086_v41 = vpop.eup %1085  ;;  %1021 = vmatprep.mubr.bf16.mxu0 %v342_v44  ;;  %v607_v50 = vpack.c.bf16 %v600_v45, %v599_v37  ;;  %v337_v51 = vmul.f32 %v329_v46, %v305_v34  ;;  %v594_v53 = vadd.f32 1.0, %v1084_v47 }
  0x2d   : > { %v601_v54 = vmul.f32 %v593_v49, %v569_v35  ;;  %v330_v57 = vadd.f32 1.0, %v1086_v41  ;;  %v1088_v58 = vpop.eup %1087 }
  0x2e   : > { %1045 = vmatprep.mubr.bf16.mxu1 %v607_v50  ;;  %v343_v59 = vpack.c.bf16 %v337_v51, %v336_v48  ;;  %v602_v42 = vmul.f32 %v594_v53, %v570_v31  ;;  %v331_v60 = vadd.f32 1.0, %v1088_v58  ;;  %v1090_v63 = vpop.eup %1089 }
  0x2f   : > { %v338_v61 = vmul.f32 %v330_v57, %v306_v39  ;;  %v1092_v5 = vpop.eup %1091  ;;  %v595_v7 = vadd.f32 1.0, %v1090_v63 }
  0x30   : > { %1022 = vmatmul.mubr.bf16.vlgmr.msra.gmra.mxu0 %v343_v59  ;;  %v608_v62 = vpack.c.bf16 %v602_v42, %v601_v54  ;;  %v339_v0 = vmul.f32 %v331_v60, %v307_v55  ;;  %v1094_v8 = vpop.eup %1093  ;;  %v596_v10 = vadd.f32 1.0, %v1092_v5 }
  0x31   : > { %v1096_v14 = vpop.eup %1095  ;;  %v603_v15 = vmul.f32 %v595_v7, %v571_v52  ;;  %v332_v16 = vadd.f32 1.0, %v1094_v8 }
  0x32   : > { %1046 = vmatmul.mubr.bf16.vlgmr.msra.gmra.mxu1 %v608_v62  ;;  %v344_v9 = vpack.c.bf16 %v339_v0, %v338_v61  ;;  %v604_v17 = vmul.f32 %v596_v10, %v572_v3  ;;  %v333_v1 = vadd.f32 1.0, %v1096_v14  ;;  %v1098_v21 = vpop.eup %1097 }
  0x33   : > { %v340_v18 = vmul.f32 %v332_v16, %v308_v56  ;;  %v1100_v22 = vpop.eup %1099  ;;  %v597_v24 = vadd.f32 1.0, %v1098_v21 }
  0x34   : > { %1025 = vmatprep.mubr.bf16.mxu0 %v344_v9  ;;  %v609_v19 = vpack.c.bf16 %v604_v17, %v603_v15  ;;  %v341_v20 = vmul.f32 %v333_v1, %v309_v13  ;;  %v598_v12 = vadd.f32 1.0, %v1100_v22 }
  0x35   : > { %v605_v27 = vmul.f32 %v597_v24, %v573_v2 }
  0x36   : > { %1049 = vmatprep.mubr.bf16.mxu1 %v609_v19  ;;  %v345_v23 = vpack.c.bf16 %v341_v20, %v340_v18  ;;  %v606_v4 = vmul.f32 %v598_v12, %v574_v6 }
  0x38   : > { %1026 = vmatmul.mubr.bf16.gmra.mxu0 %v345_v23  ;;  %v610_v28 = vpack.c.bf16 %v606_v4, %v605_v27 }
  0x3a   : > { %1050 = vmatmul.mubr.bf16.gmra.mxu1 %v610_v28 }
  0xf0   : > { %v1023_v29 = vpop.f32.mrf.mxu0 }
  0xf1   : > { %v515_v48 = vmul.f32 %v1023_v29, %v1023_v29 }
  0xf2   : > { %v1047_v32 = vpop.f32.mrf.mxu1  ;;  %v428_v30 = vpop.f32.mrf.mxu0 }
  0xf3   : > { %v513_v40 = vmul.f32 %v428_v30, %v428_v30  ;;  %v732_v39 = vmul.f32 %v1047_v32, %v1047_v32 }
  0xf4   : > { %v645_v33 = vpop.f32.mrf.mxu1  ;;  %v1024_v25 = vpop.f32.mrf.mxu0 }
  0xf5   : > { %v919_v26 = vpack.c.bf16 %v1024_v25, %v1023_v29  ;;  %v730_v11 = vmul.f32 %v645_v33, %v645_v33  ;;  %v516_v54 = vmul.f32 %v1024_v25, %v1024_v25 }
  0xf6   : > { %v1048_v34 = vpop.f32.mrf.mxu1  ;;  %v431_v35 = vpop.f32.mrf.mxu0 }
  0xf7   : > { %970 = vst [vmem:[%s1303_s25 + $0x8] sm:$0xff] %v919_v26   ;;  %v955_v36 = vpack.c.bf16 %v1048_v34, %v1047_v32  ;;  %v914_v37 = vpack.c.bf16 %v431_v35, %v428_v30  ;;  %v499_v38 = vadd.f32 %v431_v35, %v428_v30  ;;  %v514_v43 = vmul.f32 %v431_v35, %v431_v35 }
  0xf8   : > { %v648_v44 = vpop.f32.mrf.mxu1  ;;  %v1027_v51 = vpop.f32.mrf.mxu0  ;;  %v733_v61 = vmul.f32 %v1048_v34, %v1048_v34 }
  0xf9   : > { %978 = vst [vmem:[%s1303_s25 + $0x28] sm:$0xff] %v955_v36   ;;  %915 = vst [vmem:[%s1303_s25] sm:$0xff] %v914_v37   ;;  %v500_v45 = vadd.f32 %v1023_v29, %v499_v38  ;;  %v950_v46 = vpack.c.bf16 %v648_v44, %v645_v33  ;;  %v716_v31 = vadd.f32 %v648_v44, %v645_v33 }
  0xfa   : > { %v731_v47 = vmul.f32 %v648_v44, %v648_v44  ;;  %v521_v49 = vadd.f32 %v514_v43, %v513_v40  ;;  %v444_v58 = vpop.f32.mrf.mxu0  ;;  %v1051_v63 = vpop.f32.mrf.mxu1  ;;  %v519_v15 = vmul.f32 %v1027_v51, %v1027_v51 }
  0xfb   : > { %977 = vst [vmem:[%s1303_s25 + $0x20] sm:$0xff] %v950_v46   ;;  %v717_v41 = vadd.f32 %v1047_v32, %v716_v31  ;;  %v501_v53 = vadd.f32 %v1024_v25, %v500_v45  ;;  %v517_v42 = vmul.f32 %v444_v58, %v444_v58  ;;  %v736_v4 = vmul.f32 %v1051_v63, %v1051_v63 }
  0xfc   : > { %v738_v50 = vadd.f32 %v731_v47, %v730_v11  ;;  %v522_v55 = vadd.f32 %v521_v49, %v515_v48  ;;  %v1028_v52 = vpop.f32.mrf.mxu0  ;;  %v661_v56 = vpop.f32.mrf.mxu1 }
  0xfd   : > { %v502_v59 = vadd.f32 %v501_v53, %v444_v58  ;;  %v718_v62 = vadd.f32 %v1048_v34, %v717_v41  ;;  %v929_v3 = vpack.c.bf16 %v1028_v52, %v1027_v51  ;;  %v734_v14 = vmul.f32 %v661_v56, %v661_v56 }
  0xfe   : > { %v739_v57 = vadd.f32 %v738_v50, %v732_v39  ;;  %v523_v60 = vadd.f32 %v522_v55, %v516_v54  ;;  %v447_v7 = vpop.f32.mrf.mxu0  ;;  %v1052_v16 = vpop.f32.mrf.mxu1  ;;  %v520_v20 = vmul.f32 %v1028_v52, %v1028_v52 }
  0xff   : > { %972 = vst [vmem:[%s1303_s25 + $0x18] sm:$0xff] %v929_v3   ;;  %v924_v8 = vpack.c.bf16 %v447_v7, %v444_v58  ;;  %v503_v9 = vadd.f32 %v502_v59, %v447_v7  ;;  %v518_v10 = vmul.f32 %v447_v7, %v447_v7  ;;  %v719_v13 = vadd.f32 %v718_v62, %v661_v56 }
 0x100   : > { %v524_v0 = vadd.f32 %v523_v60, %v517_v42  ;;  %v740_v5 = vadd.f32 %v739_v57, %v733_v61  ;;  %v965_v19 = vpack.c.bf16 %v1052_v16, %v1051_v63  ;;  %v664_v6 = vpop.f32.mrf.mxu1  ;;  %v737_v33 = vmul.f32 %v1052_v16, %v1052_v16 }
 0x101   : > { %971 = vst [vmem:[%s1303_s25 + $0x10] sm:$0xff] %v924_v8   ;;  %v504_v17 = vadd.f32 %v1027_v51, %v503_v9  ;;  %v960_v22 = vpack.c.bf16 %v664_v6, %v661_v56  ;;  %v720_v23 = vadd.f32 %v719_v13, %v664_v6  ;;  %v735_v24 = vmul.f32 %v664_v6, %v664_v6 }
 0x102   : > { %v525_v1 = vadd.f32 %v524_v0, %v518_v10  ;;  %v741_v18 = vadd.f32 %v740_v5, %v734_v14  ;;  %980 = vst [vmem:[%s1303_s25 + $0x38] sm:$0xff] %v965_v19  }
 0x103   : > { %v505_v2 = vadd.f32 %v1028_v52, %v504_v17  ;;  %979 = vst [vmem:[%s1303_s25 + $0x30] sm:$0xff] %v960_v22   ;;  %v721_v28 = vadd.f32 %v1051_v63, %v720_v23 }
 0x104   : > { %v526_v21 = vadd.f32 %v525_v1, %v519_v15  ;;  %v742_v29 = vadd.f32 %v741_v18, %v735_v24 }
 0x105   : > { %v506_v12 = vrot.slane %v505_v2, 4  ;;  %v722_v25 = vadd.f32 %v1052_v16, %v721_v28 }
 0x106   : > { %v527_v27 = vadd.f32 %v526_v21, %v520_v20  ;;  %v743_v26 = vadd.f32 %v742_v29, %v736_v4 }
 0x107   : > { %v507_v32 = vadd.f32 %v506_v12, %v505_v2  ;;  %v723_v36 = vrot.slane %v722_v25, 4 }
 0x108   : > { %v528_v30 = vrot.slane %v527_v27, 4  ;;  %v744_v37 = vadd.f32 %v743_v26, %v737_v33 }
 0x109   : > { %v508_v34 = vrot.slane %v507_v32, 2  ;;  %v724_v11 = vadd.f32 %v723_v36, %v722_v25 }
 0x10a   : > { %v529_v35 = vadd.f32 %v528_v30, %v527_v27  ;;  %v745_v43 = vrot.slane %v744_v37, 4 }
 0x10b   : > { %v509_v38 = vadd.f32 %v508_v34, %v507_v32  ;;  %v725_v46 = vrot.slane %v724_v11, 2 }
 0x10c   : > { %v530_v40 = vrot.slane %v529_v35, 2  ;;  %v746_v31 = vadd.f32 %v745_v43, %v744_v37 }
 0x10d   : > { %v510_v45 = vrot.slane %v509_v38, 1  ;;  %v726_v48 = vadd.f32 %v725_v46, %v724_v11 }
 0x10e   : > { %v531_v44 = vadd.f32 %v530_v40, %v529_v35  ;;  %v747_v49 = vrot.slane %v746_v31, 2 }
 0x10f   : > { %v511_v39 = vadd.f32 %v510_v45, %v509_v38  ;;  %v727_v41 = vrot.slane %v726_v48, 1 }
 0x110   : > { %v532_v47 = vrot.slane %v531_v44, 1  ;;  %v748_v50 = vadd.f32 %v747_v49, %v746_v31 }
 0x111   : > { %v728_v53 = vadd.f32 %v727_v41, %v726_v48 }
 0x112   : > { %v533_v51 = vadd.f32 %v532_v47, %v531_v44  ;;  %v749_v54 = vrot.slane %v748_v50, 1 }
 0x113   : > { %v729_v55 = vadd.f32 %v728_v53, %v511_v39 }
 0x114   : > { %v750_v57 = vadd.f32 %v749_v54, %v748_v50 }
 0x115   : > { %752 = vst [vmem:[%s238_s28] sm:$0x1] %v729_v55 }
 0x116   : > { %v751_v58 = vadd.f32 %v750_v57, %v533_v51 }
 0x118   : > { %753 = vst [vmem:[%s238_s28 + $0x1] sm:$0x1] %v751_v58 }
 0x119 PF: > { %s16_s18 = sadd.s32 1, %s1107_s18  }
 0x11a   : > { %p13_p5 = scmp.ge.s32.totalorder %s16_s18, 4  }
 0x11c   :  { %15 = sbr.rel (!%p13_p5) target bundleno = 1 (0x1), region = 78 }

</bundles_post_ra>
